<compile_context>
chip_gen: v5e
topology: v5e:2x2
jax: 0.10.0
libtpu: 0.0.40
codegen_flags: <defaults>
</compile_context>

<pallas_src>
import functools

import jax
import jax.numpy as jnp
from jax import lax
from jax.experimental import pallas as pl
from jax.experimental.pallas import tpu as pltpu


def _round_up(x, m):
    return (x + m - 1) // m * m


def _fuser_kernel(scale_ref, shift_ref, bev_ref, aer_ref, w1_ref, b1_ref,
                  w2_ref, b2_ref, out_ref, comb_ref, *, TH, Wp, C, Lt_pad):
    """One (batch, row-tile) grid step.

    bev_ref/aer_ref : (C, Lt_pad) bf16 — padded-input rows [t*TH, t*TH+TH+4)
                      flattened row-major with stride Wp (= W+2), +2 lane
                      overrun for the last 3x3 tap, lane-rounded.
    w1_ref          : (C, 9*C)  bf16  (tap-major, in-channel minor)
    w2_ref          : (C, 18*C) bf16  (tap-major, [bev|aer]-channel minor)
    b1_ref/b2_ref   : (C, 1)    f32
    scale_ref       : (1,)      f32 in SMEM
    shift_ref       : (1, N2)   f32, pre-masked to 0 on pad columns and on the
                      tile's out-of-image halo rows.
    out_ref         : (C, TH, Wp) — tile's output rows (pad cols cropped by caller)
    comb_ref        : (2*C, Lt_pad) bf16 scratch — padded conv2 operand.
    """
    N2 = (TH + 2) * Wp            # gate / comb-interior window (TH rows + 1-row halo)
    Nout = TH * Wp                # conv2 output window
    c0 = Wp + 1                   # flat offset of the comb window (local row 1, col 1)
    starts = tuple(dy * Wp + dx for dy in range(3) for dx in range(3))

    def conv3x3(w_ref, src_ref, src_off, cin, n):
        # 9 accumulating per-tap MXU dots straight off the bf16 ref (f32 acc).
        acc = None
        for k, s in enumerate(starts):
            part = jnp.dot(w_ref[:, k * cin:(k + 1) * cin],
                           src_ref[:, src_off + s:src_off + s + n],
                           preferred_element_type=jnp.float32)
            acc = part if acc is None else acc + part
        return acc

    # ---- conv1 (3x3, C->C) over the TH+2 comb rows, exact sigmoid gate ----
    acc1 = conv3x3(w1_ref, bev_ref, 0, C, N2) + b1_ref[...]
    gate = 1.0 / (1.0 + jnp.exp(-acc1))                      # exp on the EUP

    # ---- gated blend; only the interior windows are up-cast to f32 ----
    bev_q = bev_ref[:, c0:c0 + N2].astype(jnp.float32)
    aer_q = aer_ref[:, c0:c0 + N2].astype(jnp.float32)
    aer_s = aer_q * scale_ref[0] + shift_ref[...]            # shift pre-masked

    # conv2 operand: everything outside the written interior must be zero.
    # Only two thin strips are re-zeroed each step (scratch is per-core,
    # nothing is gated on program_id — megacore-safe).
    comb_ref[:, :c0] = jnp.zeros((2 * C, c0), jnp.bfloat16)
    comb_ref[:, c0 + N2:] = jnp.zeros((2 * C, Lt_pad - (c0 + N2)), jnp.bfloat16)
    comb_ref[:C, c0:c0 + N2] = (gate * bev_q).astype(jnp.bfloat16)
    comb_ref[C:2 * C, c0:c0 + N2] = ((1.0 - gate) * aer_s).astype(jnp.bfloat16)

    # ---- conv2 (3x3, 2C->C) over the tile's TH output rows ----
    acc2 = conv3x3(w2_ref, comb_ref, Wp, 2 * C, Nout) + b2_ref[...]

    # Store row by row (avoids an in-kernel lane->(sublane,lane) reshape).
    for r in range(TH):
        out_ref[:, r, :] = acc2[:, r * Wp:(r + 1) * Wp].astype(out_ref.dtype)


def advanced_dynamic_conv_fuser(bev_embed, aerial_feature, w1, b1, w2, b2,
                                *, tile_rows=8, out_dtype=jnp.float32):
    """Inputs in PyTorch NCHW; w1: (C, C, 3, 3), b1: (C,), w2: (C, 2C, 3, 3), b2: (C,)."""
    B, Cin, H, W = bev_embed.shape
    Cout = w1.shape[0]
    if Cout != Cin:
        # gate (Cout ch) multiplies bev (Cin ch) elementwise in the reference module
        raise ValueError("AdvancedDynamicConvFuser requires out_channels == in_channels")
    C = Cout
    Wp = W + 2

    TH = H if H < tile_rows else tile_rows
    if TH != H and TH % 8 != 0:
        raise ValueError("tile_rows must be a multiple of 8 (TPU sublane tiling)")
    T = pl.cdiv(H, TH)
    Ht = T * TH
    Lt_in = (TH + 4) * Wp                      # tile rows incl. 2-row halo each side
    Lt_pad = _round_up(Lt_in + 2, 128)         # +2: last 3x3 tap window overruns by 2 lanes
    N2 = (TH + 2) * Wp

    # ---- global-stats pre-pass (pure JAX, f32).  torch .std() is unbiased. ----
    bev32 = bev_embed.astype(jnp.float32)
    aer32 = aerial_feature.astype(jnp.float32)
    bev_mean = jnp.mean(bev32)
    bev_std = jnp.std(bev32, ddof=1)
    aer_mean = jnp.mean(aer32)
    aer_std = jnp.std(aer32, ddof=1)
    scale = bev_std / (aer_std + 1e-6)
    shift = bev_mean - aer_mean * scale

    # ---- layout plumbing: one fused bf16 pad + row-window pass per input.
    # Each tile's (TH+4)-row halo window is materialised contiguously so the
    # kernel gets plain non-overlapping blocks; HBM duplication is 4/TH (bf16).
    def to_tiles(x):
        xb = x.astype(jnp.bfloat16)
        xp = jnp.pad(xb, ((0, 0), (0, 0), (2, 2 + Ht - H), (1, 1)))   # (B,C,Ht+4,Wp)
        win = jnp.stack(
            [xp[:, :, t * TH:t * TH + TH + 4, :] for t in range(T)], axis=1)
        win = win.reshape(B, T, C, Lt_in)
        return jnp.pad(win, ((0, 0), (0, 0), (0, 0), (0, Lt_pad - Lt_in)))

    bev_tiles = to_tiles(bev_embed)
    aer_tiles = to_tiles(aerial_feature)

    # OIHW -> (Cout, tap*Cin): each 3x3 tap becomes one (Cout, Cin) MXU operand.
    w1_r = jnp.transpose(w1, (0, 2, 3, 1)).reshape(C, 9 * C).astype(jnp.bfloat16)
    w2_r = jnp.transpose(w2, (0, 2, 3, 1)).reshape(C, 9 * 2 * C).astype(jnp.bfloat16)
    b1_r = b1.reshape(C, 1).astype(jnp.float32)
    b2_r = b2.reshape(C, 1).astype(jnp.float32)
    scale_arr = jnp.reshape(scale, (1,)).astype(jnp.float32)

    # Per-tile shift row, pre-masked to zero on pad columns and on comb rows
    # outside the real image (so the kernel needs no boundary branches).
    j = jnp.arange(N2, dtype=jnp.int32)
    col = (j + 1) % Wp                                  # padded-column index
    loc_row = (j + Wp + 1) // Wp                        # tile-local padded row (1..TH+2)
    orig_row = jnp.arange(T, dtype=jnp.int32)[:, None] * TH + loc_row[None, :] - 2
    valid = (col >= 1) & (col <= W) & (orig_row >= 0) & (orig_row < H)
    shift_tiles = jnp.where(valid, shift, 0.0).astype(jnp.float32).reshape(T, 1, N2)

    # Generation-aware VMEM ceiling: ~3/4 of physical (v5e/v6e ~96 MiB, v7x ~48 MiB).
    try:
        vmem_cap = pltpu.get_tpu_info().vmem_capacity_bytes
    except Exception:
        vmem_cap = 64 * 1024 * 1024
    vmem_limit = int(min(100 * 1024 * 1024, (vmem_cap * 3) // 4))

    kernel = functools.partial(_fuser_kernel, TH=TH, Wp=Wp, C=C, Lt_pad=Lt_pad)

    out = pl.pallas_call(
        kernel,
        grid=(B, T),                     # row-tile axis innermost; weights stay resident
        out_shape=jax.ShapeDtypeStruct((B, C, Ht, Wp), out_dtype),
        in_specs=[
            pl.BlockSpec(memory_space=pltpu.MemorySpace.SMEM),                 # scale scalar
            pl.BlockSpec((None, 1, N2), lambda b, t: (t, 0, 0)),               # masked shift row
            pl.BlockSpec((None, None, C, Lt_pad), lambda b, t: (b, t, 0, 0)),  # bev tile
            pl.BlockSpec((None, None, C, Lt_pad), lambda b, t: (b, t, 0, 0)),  # aerial tile
            pl.BlockSpec((C, 9 * C), lambda b, t: (0, 0)),                     # w1
            pl.BlockSpec((C, 1), lambda b, t: (0, 0)),                         # b1
            pl.BlockSpec((C, 18 * C), lambda b, t: (0, 0)),                    # w2
            pl.BlockSpec((C, 1), lambda b, t: (0, 0)),                         # b2
        ],
        out_specs=pl.BlockSpec((None, C, TH, Wp), lambda b, t: (b, 0, t, 0)),
        scratch_shapes=[pltpu.VMEM((2 * C, Lt_pad), jnp.bfloat16)],            # conv2 operand
        compiler_params=pltpu.CompilerParams(
            dimension_semantics=("parallel", "parallel"),
            vmem_limit_bytes=vmem_limit,
        ),
    )(scale_arr, shift_tiles, bev_tiles, aer_tiles, w1_r, b1_r, w2_r, b2_r)

    # drop the ragged bottom rows and the 2 pad columns per row
    return out[:, :, :H, :W]


def _reference(bev, aer, w1, b1, w2, b2):
    """Pure-JAX NCHW reference matching the PyTorch forward (full f32)."""
    bev_mean = jnp.mean(bev)
    bev_std = jnp.std(bev, ddof=1)
    aer_mean = jnp.mean(aer)
    aer_std = jnp.std(aer, ddof=1)
    aer_scaled = (aer - aer_mean) / (aer_std + 1e-6) * bev_std + bev_mean

    dn = ('NCHW', 'OIHW', 'NCHW')
    conv1 = lax.conv_general_dilated(bev, w1, (1, 1), 'SAME', dimension_numbers=dn)
    gate = jax.nn.sigmoid(conv1 + b1[None, :, None, None])
    wb = gate * bev
    wa = (1.0 - gate) * aer_scaled
    comb = jnp.concatenate([wb, wa], axis=1)
    conv2 = lax.conv_general_dilated(comb, w2, (1, 1), 'SAME', dimension_numbers=dn)
    return conv2 + b2[None, :, None, None]


def _run_case(key, B, C, H, W, tile_rows):
    k1, k2, k3, k4, k5, k6 = jax.random.split(key, 6)

    # Deterministic synthetic parameters (shapes from nn.Conv2d in __init__)
    w1 = jax.random.normal(k1, (C, C, 3, 3), jnp.float32) * 0.1
    b1 = jax.random.normal(k2, (C,), jnp.float32) * 0.1
    w2 = jax.random.normal(k3, (C, 2 * C, 3, 3), jnp.float32) * 0.1
    b2 = jax.random.normal(k4, (C,), jnp.float32) * 0.1

    # Inputs (PyTorch NCHW convention)
    bev = jax.random.normal(k5, (B, C, H, W), jnp.float32)
    aer = jax.random.normal(k6, (B, C, H, W), jnp.float32) * 2.0 + 0.5

    fuser = jax.jit(functools.partial(advanced_dynamic_conv_fuser, tile_rows=tile_rows))
    fused = jax.block_until_ready(fuser(bev, aer, w1, b1, w2, b2))

    ref = _reference(bev, aer, w1, b1, w2, b2)
    assert fused.shape == (B, C, H, W), fused.shape
    # bf16 activations / MXU operands -> tolerance loosened vs. a pure-f32 pipeline.
    assert jnp.allclose(fused, ref, atol=5e-2, rtol=5e-2), \
        float(jnp.max(jnp.abs(fused - ref)))


if __name__ == "__main__":
    key = jax.random.PRNGKey(0)
    k_a, k_b = jax.random.split(key)

    # Small canonical shapes: batch=2, channels=8, spatial 16x16, two row tiles.
    _run_case(k_a, B=2, C=8, H=16, W=16, tile_rows=8)
    # Structural coverage: ragged H (H % tile_rows != 0), non-square W, wider C
    # (exercises the lane-rounded Lt_pad overrun window and the halo masking).
    _run_case(k_b, B=1, C=16, H=20, W=24, tile_rows=8)

    print("KERNEL_OK")
</pallas_src>

<mosaic_0001>
module attributes {stable_mosaic.version = 11 : i64} {
  func.func @_fuser_kernel(%arg0: i32, %arg1: i32, %arg2: memref<1xf32, #tpu.memory_space<smem>>, %arg3: memref<1x1x180xf32, #tpu.memory_space<vmem>>, %arg4: memref<1x1x8x256xbf16, #tpu.memory_space<vmem>>, %arg5: memref<1x1x8x256xbf16, #tpu.memory_space<vmem>>, %arg6: memref<8x72xbf16, #tpu.memory_space<vmem>>, %arg7: memref<8x1xf32, #tpu.memory_space<vmem>>, %arg8: memref<8x144xbf16, #tpu.memory_space<vmem>>, %arg9: memref<8x1xf32, #tpu.memory_space<vmem>>, %arg10: memref<1x8x8x18xf32, #tpu.memory_space<vmem>>, %arg11: memref<16x256xbf16, #tpu.memory_space<vmem>>) attributes {dimension_semantics = [#tpu.dimension_semantics<parallel>, #tpu.dimension_semantics<parallel>], iteration_bounds = array<i64: 2, 2>, scalar_prefetch = 0 : i64, scratch_operands = 1 : i64, tpu.core_type = #tpu.core_type<tc>, window_params = [{transform_indices = @transform_0, window_bounds = array<i64: 1>}, {transform_indices = @transform_1, window_bounds = array<i64: 1, 1, 180>}, {transform_indices = @transform_2, window_bounds = array<i64: 1, 1, 8, 256>}, {transform_indices = @transform_3, window_bounds = array<i64: 1, 1, 8, 256>}, {pipeline_mode = #tpu.pipeline_mode<synchronous>, transform_indices = @transform_4, window_bounds = array<i64: 8, 72>}, {pipeline_mode = #tpu.pipeline_mode<synchronous>, transform_indices = @transform_5, window_bounds = array<i64: 8, 1>}, {pipeline_mode = #tpu.pipeline_mode<synchronous>, transform_indices = @transform_6, window_bounds = array<i64: 8, 144>}, {pipeline_mode = #tpu.pipeline_mode<synchronous>, transform_indices = @transform_7, window_bounds = array<i64: 8, 1>}, {transform_indices = @transform_8, window_bounds = array<i64: 1, 8, 8, 18>}]} {
    %c0 = arith.constant 0 : index
    %c0_0 = arith.constant 0 : index
    %0 = vector.load %arg6[%c0, %c0_0] : memref<8x72xbf16, #tpu.memory_space<vmem>>, vector<8x8xbf16>
    %c0_1 = arith.constant 0 : index
    %c0_2 = arith.constant 0 : index
    %c0_3 = arith.constant 0 : index
    %c0_4 = arith.constant 0 : index
    %1 = vector.load %arg4[%c0_1, %c0_2, %c0_3, %c0_4] : memref<1x1x8x256xbf16, #tpu.memory_space<vmem>>, vector<1x1x8x180xbf16>
    %2 = vector.shape_cast %1 : vector<1x1x8x180xbf16> to vector<8x180xbf16>
    %cst = arith.constant dense<0.000000e+00> : vector<8x180xf32>
    %3 = tpu.matmul %0, %2, %cst {dimension_numbers = #tpu.dot_dimension_numbers<[1], [0], [0], [1], [0, 0, 1, 1], [], []>} : vector<8x8xbf16>, vector<8x180xbf16>, vector<8x180xf32> -> vector<8x180xf32>
    %c0_5 = arith.constant 0 : index
    %c8 = arith.constant 8 : index
    %4 = vector.load %arg6[%c0_5, %c8] : memref<8x72xbf16, #tpu.memory_space<vmem>>, vector<8x8xbf16>
    %c0_6 = arith.constant 0 : index
    %c0_7 = arith.constant 0 : index
    %c0_8 = arith.constant 0 : index
    %c1 = arith.constant 1 : index
    %5 = vector.load %arg4[%c0_6, %c0_7, %c0_8, %c1] : memref<1x1x8x256xbf16, #tpu.memory_space<vmem>>, vector<1x1x8x180xbf16>
    %6 = vector.shape_cast %5 : vector<1x1x8x180xbf16> to vector<8x180xbf16>
    %cst_9 = arith.constant dense<0.000000e+00> : vector<8x180xf32>
    %7 = tpu.matmul %4, %6, %cst_9 {dimension_numbers = #tpu.dot_dimension_numbers<[1], [0], [0], [1], [0, 0, 1, 1], [], []>} : vector<8x8xbf16>, vector<8x180xbf16>, vector<8x180xf32> -> vector<8x180xf32>
    %8 = arith.addf %3, %7 : vector<8x180xf32>
    %c0_10 = arith.constant 0 : index
    %c16 = arith.constant 16 : index
    %9 = vector.load %arg6[%c0_10, %c16] : memref<8x72xbf16, #tpu.memory_space<vmem>>, vector<8x8xbf16>
    %c0_11 = arith.constant 0 : index
    %c0_12 = arith.constant 0 : index
    %c0_13 = arith.constant 0 : index
    %c2 = arith.constant 2 : index
    %10 = vector.load %arg4[%c0_11, %c0_12, %c0_13, %c2] : memref<1x1x8x256xbf16, #tpu.memory_space<vmem>>, vector<1x1x8x180xbf16>
    %11 = vector.shape_cast %10 : vector<1x1x8x180xbf16> to vector<8x180xbf16>
    %cst_14 = arith.constant dense<0.000000e+00> : vector<8x180xf32>
    %12 = tpu.matmul %9, %11, %cst_14 {dimension_numbers = #tpu.dot_dimension_numbers<[1], [0], [0], [1], [0, 0, 1, 1], [], []>} : vector<8x8xbf16>, vector<8x180xbf16>, vector<8x180xf32> -> vector<8x180xf32>
    %13 = arith.addf %8, %12 : vector<8x180xf32>
    %c0_15 = arith.constant 0 : index
    %c24 = arith.constant 24 : index
    %14 = vector.load %arg6[%c0_15, %c24] : memref<8x72xbf16, #tpu.memory_space<vmem>>, vector<8x8xbf16>
    %c0_16 = arith.constant 0 : index
    %c0_17 = arith.constant 0 : index
    %c0_18 = arith.constant 0 : index
    %c18 = arith.constant 18 : index
    %15 = vector.load %arg4[%c0_16, %c0_17, %c0_18, %c18] : memref<1x1x8x256xbf16, #tpu.memory_space<vmem>>, vector<1x1x8x180xbf16>
    %16 = vector.shape_cast %15 : vector<1x1x8x180xbf16> to vector<8x180xbf16>
    %cst_19 = arith.constant dense<0.000000e+00> : vector<8x180xf32>
    %17 = tpu.matmul %14, %16, %cst_19 {dimension_numbers = #tpu.dot_dimension_numbers<[1], [0], [0], [1], [0, 0, 1, 1], [], []>} : vector<8x8xbf16>, vector<8x180xbf16>, vector<8x180xf32> -> vector<8x180xf32>
    %18 = arith.addf %13, %17 : vector<8x180xf32>
    %c0_20 = arith.constant 0 : index
    %c32 = arith.constant 32 : index
    %19 = vector.load %arg6[%c0_20, %c32] : memref<8x72xbf16, #tpu.memory_space<vmem>>, vector<8x8xbf16>
    %c0_21 = arith.constant 0 : index
    %c0_22 = arith.constant 0 : index
    %c0_23 = arith.constant 0 : index
    %c19 = arith.constant 19 : index
    %20 = vector.load %arg4[%c0_21, %c0_22, %c0_23, %c19] : memref<1x1x8x256xbf16, #tpu.memory_space<vmem>>, vector<1x1x8x180xbf16>
    %21 = vector.shape_cast %20 : vector<1x1x8x180xbf16> to vector<8x180xbf16>
    %cst_24 = arith.constant dense<0.000000e+00> : vector<8x180xf32>
    %22 = tpu.matmul %19, %21, %cst_24 {dimension_numbers = #tpu.dot_dimension_numbers<[1], [0], [0], [1], [0, 0, 1, 1], [], []>} : vector<8x8xbf16>, vector<8x180xbf16>, vector<8x180xf32> -> vector<8x180xf32>
    %23 = arith.addf %18, %22 : vector<8x180xf32>
    %c0_25 = arith.constant 0 : index
    %c40 = arith.constant 40 : index
    %24 = vector.load %arg6[%c0_25, %c40] : memref<8x72xbf16, #tpu.memory_space<vmem>>, vector<8x8xbf16>
    %c0_26 = arith.constant 0 : index
    %c0_27 = arith.constant 0 : index
    %c0_28 = arith.constant 0 : index
    %c20 = arith.constant 20 : index
    %25 = vector.load %arg4[%c0_26, %c0_27, %c0_28, %c20] : memref<1x1x8x256xbf16, #tpu.memory_space<vmem>>, vector<1x1x8x180xbf16>
    %26 = vector.shape_cast %25 : vector<1x1x8x180xbf16> to vector<8x180xbf16>
    %cst_29 = arith.constant dense<0.000000e+00> : vector<8x180xf32>
    %27 = tpu.matmul %24, %26, %cst_29 {dimension_numbers = #tpu.dot_dimension_numbers<[1], [0], [0], [1], [0, 0, 1, 1], [], []>} : vector<8x8xbf16>, vector<8x180xbf16>, vector<8x180xf32> -> vector<8x180xf32>
    %28 = arith.addf %23, %27 : vector<8x180xf32>
    %c0_30 = arith.constant 0 : index
    %c48 = arith.constant 48 : index
    %29 = vector.load %arg6[%c0_30, %c48] : memref<8x72xbf16, #tpu.memory_space<vmem>>, vector<8x8xbf16>
    %c0_31 = arith.constant 0 : index
    %c0_32 = arith.constant 0 : index
    %c0_33 = arith.constant 0 : index
    %c36 = arith.constant 36 : index
    %30 = vector.load %arg4[%c0_31, %c0_32, %c0_33, %c36] : memref<1x1x8x256xbf16, #tpu.memory_space<vmem>>, vector<1x1x8x180xbf16>
    %31 = vector.shape_cast %30 : vector<1x1x8x180xbf16> to vector<8x180xbf16>
    %cst_34 = arith.constant dense<0.000000e+00> : vector<8x180xf32>
    %32 = tpu.matmul %29, %31, %cst_34 {dimension_numbers = #tpu.dot_dimension_numbers<[1], [0], [0], [1], [0, 0, 1, 1], [], []>} : vector<8x8xbf16>, vector<8x180xbf16>, vector<8x180xf32> -> vector<8x180xf32>
    %33 = arith.addf %28, %32 : vector<8x180xf32>
    %c0_35 = arith.constant 0 : index
    %c56 = arith.constant 56 : index
    %34 = vector.load %arg6[%c0_35, %c56] : memref<8x72xbf16, #tpu.memory_space<vmem>>, vector<8x8xbf16>
    %c0_36 = arith.constant 0 : index
    %c0_37 = arith.constant 0 : index
    %c0_38 = arith.constant 0 : index
    %c37 = arith.constant 37 : index
    %35 = vector.load %arg4[%c0_36, %c0_37, %c0_38, %c37] : memref<1x1x8x256xbf16, #tpu.memory_space<vmem>>, vector<1x1x8x180xbf16>
    %36 = vector.shape_cast %35 : vector<1x1x8x180xbf16> to vector<8x180xbf16>
    %cst_39 = arith.constant dense<0.000000e+00> : vector<8x180xf32>
    %37 = tpu.matmul %34, %36, %cst_39 {dimension_numbers = #tpu.dot_dimension_numbers<[1], [0], [0], [1], [0, 0, 1, 1], [], []>} : vector<8x8xbf16>, vector<8x180xbf16>, vector<8x180xf32> -> vector<8x180xf32>
    %38 = arith.addf %33, %37 : vector<8x180xf32>
    %c0_40 = arith.constant 0 : index
    %c64 = arith.constant 64 : index
    %39 = vector.load %arg6[%c0_40, %c64] : memref<8x72xbf16, #tpu.memory_space<vmem>>, vector<8x8xbf16>
    %c0_41 = arith.constant 0 : index
    %c0_42 = arith.constant 0 : index
    %c0_43 = arith.constant 0 : index
    %c38 = arith.constant 38 : index
    %40 = vector.load %arg4[%c0_41, %c0_42, %c0_43, %c38] : memref<1x1x8x256xbf16, #tpu.memory_space<vmem>>, vector<1x1x8x180xbf16>
    %41 = vector.shape_cast %40 : vector<1x1x8x180xbf16> to vector<8x180xbf16>
    %cst_44 = arith.constant dense<0.000000e+00> : vector<8x180xf32>
    %42 = tpu.matmul %39, %41, %cst_44 {dimension_numbers = #tpu.dot_dimension_numbers<[1], [0], [0], [1], [0, 0, 1, 1], [], []>} : vector<8x8xbf16>, vector<8x180xbf16>, vector<8x180xf32> -> vector<8x180xf32>
    %43 = arith.addf %38, %42 : vector<8x180xf32>
    %c0_45 = arith.constant 0 : index
    %c0_46 = arith.constant 0 : index
    %44 = vector.load %arg7[%c0_45, %c0_46] : memref<8x1xf32, #tpu.memory_space<vmem>>, vector<8x1xf32>
    %45 = vector.broadcast %44 : vector<8x1xf32> to vector<8x180xf32>
    %46 = arith.addf %43, %45 : vector<8x180xf32>
    %cst_47 = arith.constant 0.000000e+00 : f32
    %47 = vector.broadcast %cst_47 : f32 to vector<8x180xf32>
    %48 = arith.subf %47, %46 : vector<8x180xf32>
    %49 = math.exp %48 : vector<8x180xf32>
    %cst_48 = arith.constant 1.000000e+00 : f32
    %50 = vector.broadcast %cst_48 : f32 to vector<8x180xf32>
    %51 = arith.addf %50, %49 : vector<8x180xf32>
    %cst_49 = arith.constant 1.000000e+00 : f32
    %52 = vector.broadcast %cst_49 : f32 to vector<8x180xf32>
    %53 = arith.divf %52, %51 : vector<8x180xf32>
    %c0_50 = arith.constant 0 : index
    %c0_51 = arith.constant 0 : index
    %c0_52 = arith.constant 0 : index
    %c19_53 = arith.constant 19 : index
    %54 = vector.load %arg4[%c0_50, %c0_51, %c0_52, %c19_53] : memref<1x1x8x256xbf16, #tpu.memory_space<vmem>>, vector<1x1x8x180xbf16>
    %55 = vector.shape_cast %54 : vector<1x1x8x180xbf16> to vector<8x180xbf16>
    %56 = arith.extf %55 : vector<8x180xbf16> to vector<8x180xf32>
    %c0_54 = arith.constant 0 : index
    %c0_55 = arith.constant 0 : index
    %c0_56 = arith.constant 0 : index
    %c19_57 = arith.constant 19 : index
    %57 = vector.load %arg5[%c0_54, %c0_55, %c0_56, %c19_57] : memref<1x1x8x256xbf16, #tpu.memory_space<vmem>>, vector<1x1x8x180xbf16>
    %58 = vector.shape_cast %57 : vector<1x1x8x180xbf16> to vector<8x180xbf16>
    %59 = arith.extf %58 : vector<8x180xbf16> to vector<8x180xf32>
    %c0_58 = arith.constant 0 : index
    %60 = memref.load %arg2[%c0_58] : memref<1xf32, #tpu.memory_space<smem>>
    %61 = vector.broadcast %60 : f32 to vector<8x180xf32>
    %62 = arith.mulf %59, %61 : vector<8x180xf32>
    %c0_59 = arith.constant 0 : index
    %c0_60 = arith.constant 0 : index
    %c0_61 = arith.constant 0 : index
    %63 = vector.load %arg3[%c0_59, %c0_60, %c0_61] : memref<1x1x180xf32, #tpu.memory_space<vmem>>, vector<1x1x180xf32>
    %64 = vector.shape_cast %63 : vector<1x1x180xf32> to vector<1x180xf32>
    %65 = vector.broadcast %64 : vector<1x180xf32> to vector<8x180xf32>
    %66 = arith.addf %62, %65 : vector<8x180xf32>
    %cst_62 = arith.constant 0.000000e+00 : bf16
    %67 = vector.broadcast %cst_62 : bf16 to vector<16x19xbf16>
    %c0_63 = arith.constant 0 : index
    %c0_64 = arith.constant 0 : index
    %68 = vector.load %arg11[%c0_63, %c0_64] : memref<16x256xbf16, #tpu.memory_space<vmem>>, vector<16x19xbf16>
    tpu.vector_store %arg11[%c0_63, %c0_64], %67 {strides = array<i32>} : memref<16x256xbf16, #tpu.memory_space<vmem>>, vector<16x19xbf16>,
    %cst_65 = arith.constant 0.000000e+00 : bf16
    %69 = vector.broadcast %cst_65 : bf16 to vector<16x57xbf16>
    %c0_66 = arith.constant 0 : index
    %c199 = arith.constant 199 : index
    %70 = vector.load %arg11[%c0_66, %c199] : memref<16x256xbf16, #tpu.memory_space<vmem>>, vector<16x57xbf16>
    tpu.vector_store %arg11[%c0_66, %c199], %69 {strides = array<i32>} : memref<16x256xbf16, #tpu.memory_space<vmem>>, vector<16x57xbf16>,
    %71 = arith.mulf %53, %56 : vector<8x180xf32>
    %72 = arith.truncf %71 : vector<8x180xf32> to vector<8x180xbf16>
    %c0_67 = arith.constant 0 : index
    %c19_68 = arith.constant 19 : index
    %73 = vector.load %arg11[%c0_67, %c19_68] : memref<16x256xbf16, #tpu.memory_space<vmem>>, vector<8x180xbf16>
    tpu.vector_store %arg11[%c0_67, %c19_68], %72 {strides = array<i32>} : memref<16x256xbf16, #tpu.memory_space<vmem>>, vector<8x180xbf16>,
    %cst_69 = arith.constant 1.000000e+00 : f32
    %74 = vector.broadcast %cst_69 : f32 to vector<8x180xf32>
    %75 = arith.subf %74, %53 : vector<8x180xf32>
    %76 = arith.mulf %75, %66 : vector<8x180xf32>
    %77 = arith.truncf %76 : vector<8x180xf32> to vector<8x180xbf16>
    %c8_70 = arith.constant 8 : index
    %c19_71 = arith.constant 19 : index
    %78 = vector.load %arg11[%c8_70, %c19_71] : memref<16x256xbf16, #tpu.memory_space<vmem>>, vector<8x180xbf16>
    tpu.vector_store %arg11[%c8_70, %c19_71], %77 {strides = array<i32>} : memref<16x256xbf16, #tpu.memory_space<vmem>>, vector<8x180xbf16>,
    %c0_72 = arith.constant 0 : index
    %c0_73 = arith.constant 0 : index
    %79 = vector.load %arg8[%c0_72, %c0_73] : memref<8x144xbf16, #tpu.memory_space<vmem>>, vector<8x16xbf16>
    %c0_74 = arith.constant 0 : index
    %c18_75 = arith.constant 18 : index
    %80 = vector.load %arg11[%c0_74, %c18_75] : memref<16x256xbf16, #tpu.memory_space<vmem>>, vector<16x144xbf16>
    %cst_76 = arith.constant dense<0.000000e+00> : vector<8x144xf32>
    %81 = tpu.matmul %79, %80, %cst_76 {dimension_numbers = #tpu.dot_dimension_numbers<[1], [0], [0], [1], [0, 0, 1, 1], [], []>} : vector<8x16xbf16>, vector<16x144xbf16>, vector<8x144xf32> -> vector<8x144xf32>
    %c0_77 = arith.constant 0 : index
    %c16_78 = arith.constant 16 : index
    %82 = vector.load %arg8[%c0_77, %c16_78] : memref<8x144xbf16, #tpu.memory_space<vmem>>, vector<8x16xbf16>
    %c0_79 = arith.constant 0 : index
    %c19_80 = arith.constant 19 : index
    %83 = vector.load %arg11[%c0_79, %c19_80] : memref<16x256xbf16, #tpu.memory_space<vmem>>, vector<16x144xbf16>
    %cst_81 = arith.constant dense<0.000000e+00> : vector<8x144xf32>
    %84 = tpu.matmul %82, %83, %cst_81 {dimension_numbers = #tpu.dot_dimension_numbers<[1], [0], [0], [1], [0, 0, 1, 1], [], []>} : vector<8x16xbf16>, vector<16x144xbf16>, vector<8x144xf32> -> vector<8x144xf32>
    %85 = arith.addf %81, %84 : vector<8x144xf32>
    %c0_82 = arith.constant 0 : index
    %c32_83 = arith.constant 32 : index
    %86 = vector.load %arg8[%c0_82, %c32_83] : memref<8x144xbf16, #tpu.memory_space<vmem>>, vector<8x16xbf16>
    %c0_84 = arith.constant 0 : index
    %c20_85 = arith.constant 20 : index
    %87 = vector.load %arg11[%c0_84, %c20_85] : memref<16x256xbf16, #tpu.memory_space<vmem>>, vector<16x144xbf16>
    %cst_86 = arith.constant dense<0.000000e+00> : vector<8x144xf32>
    %88 = tpu.matmul %86, %87, %cst_86 {dimension_numbers = #tpu.dot_dimension_numbers<[1], [0], [0], [1], [0, 0, 1, 1], [], []>} : vector<8x16xbf16>, vector<16x144xbf16>, vector<8x144xf32> -> vector<8x144xf32>
    %89 = arith.addf %85, %88 : vector<8x144xf32>
    %c0_87 = arith.constant 0 : index
    %c48_88 = arith.constant 48 : index
    %90 = vector.load %arg8[%c0_87, %c48_88] : memref<8x144xbf16, #tpu.memory_space<vmem>>, vector<8x16xbf16>
    %c0_89 = arith.constant 0 : index
    %c36_90 = arith.constant 36 : index
    %91 = vector.load %arg11[%c0_89, %c36_90] : memref<16x256xbf16, #tpu.memory_space<vmem>>, vector<16x144xbf16>
    %cst_91 = arith.constant dense<0.000000e+00> : vector<8x144xf32>
    %92 = tpu.matmul %90, %91, %cst_91 {dimension_numbers = #tpu.dot_dimension_numbers<[1], [0], [0], [1], [0, 0, 1, 1], [], []>} : vector<8x16xbf16>, vector<16x144xbf16>, vector<8x144xf32> -> vector<8x144xf32>
    %93 = arith.addf %89, %92 : vector<8x144xf32>
    %c0_92 = arith.constant 0 : index
    %c64_93 = arith.constant 64 : index
    %94 = vector.load %arg8[%c0_92, %c64_93] : memref<8x144xbf16, #tpu.memory_space<vmem>>, vector<8x16xbf16>
    %c0_94 = arith.constant 0 : index
    %c37_95 = arith.constant 37 : index
    %95 = vector.load %arg11[%c0_94, %c37_95] : memref<16x256xbf16, #tpu.memory_space<vmem>>, vector<16x144xbf16>
    %cst_96 = arith.constant dense<0.000000e+00> : vector<8x144xf32>
    %96 = tpu.matmul %94, %95, %cst_96 {dimension_numbers = #tpu.dot_dimension_numbers<[1], [0], [0], [1], [0, 0, 1, 1], [], []>} : vector<8x16xbf16>, vector<16x144xbf16>, vector<8x144xf32> -> vector<8x144xf32>
    %97 = arith.addf %93, %96 : vector<8x144xf32>
    %c0_97 = arith.constant 0 : index
    %c80 = arith.constant 80 : index
    %98 = vector.load %arg8[%c0_97, %c80] : memref<8x144xbf16, #tpu.memory_space<vmem>>, vector<8x16xbf16>
    %c0_98 = arith.constant 0 : index
    %c38_99 = arith.constant 38 : index
    %99 = vector.load %arg11[%c0_98, %c38_99] : memref<16x256xbf16, #tpu.memory_space<vmem>>, vector<16x144xbf16>
    %cst_100 = arith.constant dense<0.000000e+00> : vector<8x144xf32>
    %100 = tpu.matmul %98, %99, %cst_100 {dimension_numbers = #tpu.dot_dimension_numbers<[1], [0], [0], [1], [0, 0, 1, 1], [], []>} : vector<8x16xbf16>, vector<16x144xbf16>, vector<8x144xf32> -> vector<8x144xf32>
    %101 = arith.addf %97, %100 : vector<8x144xf32>
    %c0_101 = arith.constant 0 : index
    %c96 = arith.constant 96 : index
    %102 = vector.load %arg8[%c0_101, %c96] : memref<8x144xbf16, #tpu.memory_space<vmem>>, vector<8x16xbf16>
    %c0_102 = arith.constant 0 : index
    %c54 = arith.constant 54 : index
    %103 = vector.load %arg11[%c0_102, %c54] : memref<16x256xbf16, #tpu.memory_space<vmem>>, vector<16x144xbf16>
    %cst_103 = arith.constant dense<0.000000e+00> : vector<8x144xf32>
    %104 = tpu.matmul %102, %103, %cst_103 {dimension_numbers = #tpu.dot_dimension_numbers<[1], [0], [0], [1], [0, 0, 1, 1], [], []>} : vector<8x16xbf16>, vector<16x144xbf16>, vector<8x144xf32> -> vector<8x144xf32>
    %105 = arith.addf %101, %104 : vector<8x144xf32>
    %c0_104 = arith.constant 0 : index
    %c112 = arith.constant 112 : index
    %106 = vector.load %arg8[%c0_104, %c112] : memref<8x144xbf16, #tpu.memory_space<vmem>>, vector<8x16xbf16>
    %c0_105 = arith.constant 0 : index
    %c55 = arith.constant 55 : index
    %107 = vector.load %arg11[%c0_105, %c55] : memref<16x256xbf16, #tpu.memory_space<vmem>>, vector<16x144xbf16>
    %cst_106 = arith.constant dense<0.000000e+00> : vector<8x144xf32>
    %108 = tpu.matmul %106, %107, %cst_106 {dimension_numbers = #tpu.dot_dimension_numbers<[1], [0], [0], [1], [0, 0, 1, 1], [], []>} : vector<8x16xbf16>, vector<16x144xbf16>, vector<8x144xf32> -> vector<8x144xf32>
    %109 = arith.addf %105, %108 : vector<8x144xf32>
    %c0_107 = arith.constant 0 : index
    %c128 = arith.constant 128 : index
    %110 = vector.load %arg8[%c0_107, %c128] : memref<8x144xbf16, #tpu.memory_space<vmem>>, vector<8x16xbf16>
    %c0_108 = arith.constant 0 : index
    %c56_109 = arith.constant 56 : index
    %111 = vector.load %arg11[%c0_108, %c56_109] : memref<16x256xbf16, #tpu.memory_space<vmem>>, vector<16x144xbf16>
    %cst_110 = arith.constant dense<0.000000e+00> : vector<8x144xf32>
    %112 = tpu.matmul %110, %111, %cst_110 {dimension_numbers = #tpu.dot_dimension_numbers<[1], [0], [0], [1], [0, 0, 1, 1], [], []>} : vector<8x16xbf16>, vector<16x144xbf16>, vector<8x144xf32> -> vector<8x144xf32>
    %113 = arith.addf %109, %112 : vector<8x144xf32>
    %c0_111 = arith.constant 0 : index
    %c0_112 = arith.constant 0 : index
    %114 = vector.load %arg9[%c0_111, %c0_112] : memref<8x1xf32, #tpu.memory_space<vmem>>, vector<8x1xf32>
    %115 = vector.broadcast %114 : vector<8x1xf32> to vector<8x144xf32>
    %116 = arith.addf %113, %115 : vector<8x144xf32>
    %117 = vector.extract_strided_slice %116 {offsets = [0, 0], sizes = [8, 18], strides = [1, 1]} : vector<8x144xf32> to vector<8x18xf32>
    %c0_113 = arith.constant 0 : index
    %c0_114 = arith.constant 0 : index
    %c0_115 = arith.constant 0 : index
    %c0_116 = arith.constant 0 : index
    %118 = vector.load %arg10[%c0_113, %c0_114, %c0_115, %c0_116] : memref<1x8x8x18xf32, #tpu.memory_space<vmem>>, vector<1x8x1x18xf32>
    %119 = vector.shape_cast %118 : vector<1x8x1x18xf32> to vector<8x18xf32>
    %120 = vector.shape_cast %117 : vector<8x18xf32> to vector<1x8x1x18xf32>
    tpu.vector_store %arg10[%c0_113, %c0_114, %c0_115, %c0_116], %120 {strides = array<i32>} : memref<1x8x8x18xf32, #tpu.memory_space<vmem>>, vector<1x8x1x18xf32>,
    %121 = vector.extract_strided_slice %116 {offsets = [0, 18], sizes = [8, 18], strides = [1, 1]} : vector<8x144xf32> to vector<8x18xf32>
    %c0_117 = arith.constant 0 : index
    %c0_118 = arith.constant 0 : index
    %c1_119 = arith.constant 1 : index
    %c0_120 = arith.constant 0 : index
    %122 = vector.load %arg10[%c0_117, %c0_118, %c1_119, %c0_120] : memref<1x8x8x18xf32, #tpu.memory_space<vmem>>, vector<1x8x1x18xf32>
    %123 = vector.shape_cast %122 : vector<1x8x1x18xf32> to vector<8x18xf32>
    %124 = vector.shape_cast %121 : vector<8x18xf32> to vector<1x8x1x18xf32>
    tpu.vector_store %arg10[%c0_117, %c0_118, %c1_119, %c0_120], %124 {strides = array<i32>} : memref<1x8x8x18xf32, #tpu.memory_space<vmem>>, vector<1x8x1x18xf32>,
    %125 = vector.extract_strided_slice %116 {offsets = [0, 36], sizes = [8, 18], strides = [1, 1]} : vector<8x144xf32> to vector<8x18xf32>
    %c0_121 = arith.constant 0 : index
    %c0_122 = arith.constant 0 : index
    %c2_123 = arith.constant 2 : index
    %c0_124 = arith.constant 0 : index
    %126 = vector.load %arg10[%c0_121, %c0_122, %c2_123, %c0_124] : memref<1x8x8x18xf32, #tpu.memory_space<vmem>>, vector<1x8x1x18xf32>
    %127 = vector.shape_cast %126 : vector<1x8x1x18xf32> to vector<8x18xf32>
    %128 = vector.shape_cast %125 : vector<8x18xf32> to vector<1x8x1x18xf32>
    tpu.vector_store %arg10[%c0_121, %c0_122, %c2_123, %c0_124], %128 {strides = array<i32>} : memref<1x8x8x18xf32, #tpu.memory_space<vmem>>, vector<1x8x1x18xf32>,
    %129 = vector.extract_strided_slice %116 {offsets = [0, 54], sizes = [8, 18], strides = [1, 1]} : vector<8x144xf32> to vector<8x18xf32>
    %c0_125 = arith.constant 0 : index
    %c0_126 = arith.constant 0 : index
    %c3 = arith.constant 3 : index
    %c0_127 = arith.constant 0 : index
    %130 = vector.load %arg10[%c0_125, %c0_126, %c3, %c0_127] : memref<1x8x8x18xf32, #tpu.memory_space<vmem>>, vector<1x8x1x18xf32>
    %131 = vector.shape_cast %130 : vector<1x8x1x18xf32> to vector<8x18xf32>
    %132 = vector.shape_cast %129 : vector<8x18xf32> to vector<1x8x1x18xf32>
    tpu.vector_store %arg10[%c0_125, %c0_126, %c3, %c0_127], %132 {strides = array<i32>} : memref<1x8x8x18xf32, #tpu.memory_space<vmem>>, vector<1x8x1x18xf32>,
    %133 = vector.extract_strided_slice %116 {offsets = [0, 72], sizes = [8, 18], strides = [1, 1]} : vector<8x144xf32> to vector<8x18xf32>
    %c0_128 = arith.constant 0 : index
    %c0_129 = arith.constant 0 : index
    %c4 = arith.constant 4 : index
    %c0_130 = arith.constant 0 : index
    %134 = vector.load %arg10[%c0_128, %c0_129, %c4, %c0_130] : memref<1x8x8x18xf32, #tpu.memory_space<vmem>>, vector<1x8x1x18xf32>
    %135 = vector.shape_cast %134 : vector<1x8x1x18xf32> to vector<8x18xf32>
    %136 = vector.shape_cast %133 : vector<8x18xf32> to vector<1x8x1x18xf32>
    tpu.vector_store %arg10[%c0_128, %c0_129, %c4, %c0_130], %136 {strides = array<i32>} : memref<1x8x8x18xf32, #tpu.memory_space<vmem>>, vector<1x8x1x18xf32>,
    %137 = vector.extract_strided_slice %116 {offsets = [0, 90], sizes = [8, 18], strides = [1, 1]} : vector<8x144xf32> to vector<8x18xf32>
    %c0_131 = arith.constant 0 : index
    %c0_132 = arith.constant 0 : index
    %c5 = arith.constant 5 : index
    %c0_133 = arith.constant 0 : index
    %138 = vector.load %arg10[%c0_131, %c0_132, %c5, %c0_133] : memref<1x8x8x18xf32, #tpu.memory_space<vmem>>, vector<1x8x1x18xf32>
    %139 = vector.shape_cast %138 : vector<1x8x1x18xf32> to vector<8x18xf32>
    %140 = vector.shape_cast %137 : vector<8x18xf32> to vector<1x8x1x18xf32>
    tpu.vector_store %arg10[%c0_131, %c0_132, %c5, %c0_133], %140 {strides = array<i32>} : memref<1x8x8x18xf32, #tpu.memory_space<vmem>>, vector<1x8x1x18xf32>,
    %141 = vector.extract_strided_slice %116 {offsets = [0, 108], sizes = [8, 18], strides = [1, 1]} : vector<8x144xf32> to vector<8x18xf32>
    %c0_134 = arith.constant 0 : index
    %c0_135 = arith.constant 0 : index
    %c6 = arith.constant 6 : index
    %c0_136 = arith.constant 0 : index
    %142 = vector.load %arg10[%c0_134, %c0_135, %c6, %c0_136] : memref<1x8x8x18xf32, #tpu.memory_space<vmem>>, vector<1x8x1x18xf32>
    %143 = vector.shape_cast %142 : vector<1x8x1x18xf32> to vector<8x18xf32>
    %144 = vector.shape_cast %141 : vector<8x18xf32> to vector<1x8x1x18xf32>
    tpu.vector_store %arg10[%c0_134, %c0_135, %c6, %c0_136], %144 {strides = array<i32>} : memref<1x8x8x18xf32, #tpu.memory_space<vmem>>, vector<1x8x1x18xf32>,
    %145 = vector.extract_strided_slice %116 {offsets = [0, 126], sizes = [8, 18], strides = [1, 1]} : vector<8x144xf32> to vector<8x18xf32>
    %c0_137 = arith.constant 0 : index
    %c0_138 = arith.constant 0 : index
    %c7 = arith.constant 7 : index
    %c0_139 = arith.constant 0 : index
    %146 = vector.load %arg10[%c0_137, %c0_138, %c7, %c0_139] : memref<1x8x8x18xf32, #tpu.memory_space<vmem>>, vector<1x8x1x18xf32>
    %147 = vector.shape_cast %146 : vector<1x8x1x18xf32> to vector<8x18xf32>
    %148 = vector.shape_cast %145 : vector<8x18xf32> to vector<1x8x1x18xf32>
    tpu.vector_store %arg10[%c0_137, %c0_138, %c7, %c0_139], %148 {strides = array<i32>} : memref<1x8x8x18xf32, #tpu.memory_space<vmem>>, vector<1x8x1x18xf32>,
    return
  }
  func.func @transform_0(%arg0: i32, %arg1: i32) -> i32 {
    %c0_i32 = arith.constant 0 : i32
    %c0_i32_0 = arith.constant 0 : i32
    return %c0_i32 : i32
  }
  func.func @transform_1(%arg0: i32, %arg1: i32) -> (i32, i32, i32) {
    %c0_i32 = arith.constant 0 : i32
    %c0_i32_0 = arith.constant 0 : i32
    %c0_i32_1 = arith.constant 0 : i32
    return %arg1, %c0_i32, %c0_i32_0 : i32, i32, i32
  }
  func.func @transform_2(%arg0: i32, %arg1: i32) -> (i32, i32, i32, i32) {
    %c0_i32 = arith.constant 0 : i32
    %c0_i32_0 = arith.constant 0 : i32
    %c0_i32_1 = arith.constant 0 : i32
    return %arg0, %arg1, %c0_i32, %c0_i32_0 : i32, i32, i32, i32
  }
  func.func @transform_3(%arg0: i32, %arg1: i32) -> (i32, i32, i32, i32) {
    %c0_i32 = arith.constant 0 : i32
    %c0_i32_0 = arith.constant 0 : i32
    %c0_i32_1 = arith.constant 0 : i32
    return %arg0, %arg1, %c0_i32, %c0_i32_0 : i32, i32, i32, i32
  }
  func.func @transform_4(%arg0: i32, %arg1: i32) -> (i32, i32) {
    %c0_i32 = arith.constant 0 : i32
    %c0_i32_0 = arith.constant 0 : i32
    %c0_i32_1 = arith.constant 0 : i32
    return %c0_i32, %c0_i32_0 : i32, i32
  }
  func.func @transform_5(%arg0: i32, %arg1: i32) -> (i32, i32) {
    %c0_i32 = arith.constant 0 : i32
    %c0_i32_0 = arith.constant 0 : i32
    %c0_i32_1 = arith.constant 0 : i32
    return %c0_i32, %c0_i32_0 : i32, i32
  }
  func.func @transform_6(%arg0: i32, %arg1: i32) -> (i32, i32) {
    %c0_i32 = arith.constant 0 : i32
    %c0_i32_0 = arith.constant 0 : i32
    %c0_i32_1 = arith.constant 0 : i32
    return %c0_i32, %c0_i32_0 : i32, i32
  }
  func.func @transform_7(%arg0: i32, %arg1: i32) -> (i32, i32) {
    %c0_i32 = arith.constant 0 : i32
    %c0_i32_0 = arith.constant 0 : i32
    %c0_i32_1 = arith.constant 0 : i32
    return %c0_i32, %c0_i32_0 : i32, i32
  }
  func.func @transform_8(%arg0: i32, %arg1: i32) -> (i32, i32, i32, i32) {
    %c0_i32 = arith.constant 0 : i32
    %c0_i32_0 = arith.constant 0 : i32
    %c0_i32_1 = arith.constant 0 : i32
    return %arg0, %c0_i32, %arg1, %c0_i32_0 : i32, i32, i32, i32
  }
}

</mosaic_0001>

<bundles_post_ra>
// kernel: advanced_dynamic_conv_fuser.1
= control target key start
LH: loop header
LB: loop body
LE: loop exit
PB: predicated region body
PF: predicated region fallthrough
CT: control target
= control target key end

     0   :  { %s2635_s0 = inlined_call_operand.<no memory space> [shape: f32[1], index: 0, kind: input, shape index: {}]   ;;  %s2636_s1 = inlined_call_operand.vmem [shape: f32[2,1,180], index: 1, kind: input, shape index: {}]   ;;  %s2637_s2 = inlined_call_operand.vmem [shape: bf16[2,2,8,256], index: 2, kind: input, shape index: {}]   ;;  %s2638_s3 = inlined_call_operand.vmem [shape: bf16[2,2,8,256], index: 3, kind: input, shape index: {}]   ;;  %s2639_s4 = inlined_call_operand.vmem [shape: bf16[8,72], index: 4, kind: input, shape index: {}]   ;;  %s2640_s5 = inlined_call_operand.vmem [shape: f32[8,1], index: 5, kind: input, shape index: {}]   ;;  %s2641_s6 = inlined_call_operand.vmem [shape: bf16[8,144], index: 6, kind: input, shape index: {}]   ;;  %s2642_s7 = inlined_call_operand.vmem [shape: f32[8,1], index: 7, kind: input, shape index: {}]   ;;  %s2643_s8 = inlined_call_operand.hbm [shape: f32[2,8,16,18], index: 8, kind: output, shape index: {}]  }
   0x1   :  { %2659 = sst [smem:[#allocation7_spill]] %s2637_s2 }
   0x2   :  { %13 = sst [smem:[#allocation3]] %s2635_s0 }
   0x3   :  { %14 = vsyncpa [#allocation5], 0 }
   0x4   :  { %16 = vsyncpa [#allocation5 + $0x1], 0  ;;  %s2099_s29 = smov 0   ;;  %s2101_s30 = smov 0  }
   0x5   :  { %s2103_s9 = smov 0   ;;  %s2105_s10 = smov 0  }
   0x6   :  { %s2107_s11 = smov 0   ;;  %s2109_s12 = smov 0  }
   0x7   :  { %s2111_s13 = smov 0   ;;  %s2113_s14 = smov 0  }
   0x8 LB: > { %s1745_s0 = sadd.s32 4294967295, %s2019_s14   ;;  %s1746_s15 = sadd.s32 4294967294, %s2019_s14   ;;  %s2019_s14 = sphi %s2113_s14, %s22_s14   ;;  %s2015_s13 = sphi %s2111_s13, %s2679_s13   ;;  %s2011_s12 = sphi %s2109_s12, %s2678_s12   ;;  %s2007_s11 = sphi %s2107_s11, %s2677_s11   ;;  %s2003_s10 = sphi %s2105_s10, %s2676_s10   ;;  %s1999_s9 = sphi %s2103_s9, %s2675_s9   ;;  %s1995_s30 = sphi %s2101_s30, %s2674_s30   ;;  %s1991_s29 = sphi %s2099_s29, %s2673_s29  }
   0x9   : > { %s31_s16 = sadd.s32 1, %s2011_s12  ;;  %s34_s17 = sadd.s32 1, %s2015_s13 }
   0xa   : > { %p32_p0 = scmp.ge.s32.totalorder %s31_s16, 2  ;;  %p240_p1 = scmp.ne.s32.totalorder %s1999_s9, %s1995_s30 }
   0xb   : > { %p241_p2 = scmp.eq.s32.totalorder %s1745_s0, 3  ;;  %p246_p5 = scmp.ne.s32.totalorder %s1995_s30, %s1991_s29 }
   0xc   : > { %s2681_s16 = smov (%p32_p0, %s31_s16), 0  ;;  %s2683_s17 = smov (!%p32_p0, %s34_s17), %s2015_s13 }
   0xd   : > { %s226_s18 = ssub.s32 %s2011_s12, %s2681_s16  ;;  %p2150_p3 = por %p241_p2, %p240_p1 }
   0xe   : > { %p36_p4 = scmp.ge.s32.totalorder %s2683_s17, 2  ;;  %p247_p6 = scmp.eq.s32.totalorder %s1746_s15, 3 }
   0xf   : > { %p1749_p7 = scmp.ge.s32.totalorder %s2019_s14, 1  ;;  %p311_p9 = scmp.lt.s32.totalorder %s2019_s14, 5 }
  0x10   : > { %s2685_s17 = smov (%p36_p4, %s2683_s17), 0  ;;  %p2159_p8 = por %p247_p6, %p246_p5 }
  0x11   : > { %s225_s21 = ssub.s32 %s2015_s13, %s2685_s17  ;;  %s230_s22 = sadd.s32 1, %s1999_s9 }
  0x12   : > { %s227_s23 = sor.u32 %s226_s18, %s225_s21  ;;  %p312_p10 = pnand %p1749_p7, %p311_p9 }
  0x13   : > { %p228_p11 = scmp.eq.s32.totalorder %s227_s23, 0  ;;  %p362_p12 = scmp.lt.s32.totalorder (!%p312_p10), %s2003_s10, 1 }
  0x14   : > { %315 = sbr.rel (%p312_p10) target bundleno = 1136 (0x470), region = 52  ;;  %p366_p13 = scmp.lt.s32.totalorder (!%p312_p10), %s2007_s11, 1 }
  0x15   : > { %s2168_s24 = scalar_select %p228_p11, %s1999_s9, %s230_s22  }
  0x16   : > { %s2021_s18 = smov (!%p312_p10), 120   ;;  %s2662_s2 = sld [smem:[#allocation7_spill]] (!%p312_p10) }
  0x17   : > { %s2652_s23 = smov (!%p312_p10), 109   ;;  %s2027_s25 = smov (!%p312_p10), 104  }
  0x19   : > { %v2175_v0 = vld [vmem:[%s2639_s4] sm:$0xf]  ;;  %s2179_s27 = scalar_select %p362_p12, %s2003_s10, 1  ;;  %vm407_vm0 = vcmask 1043456   ;;  %vm403_vm1 = vcmask 64512   ;;  %vm481_vm2 = vcmask 1031168  }
  0x1a   : > { %v388_v1 = vunpack.c.l.b16 %v2175_v0  ;;  %s367_s28 = scalar_select %p366_p13, %s2007_s11, 1  ;;  %vm401_vm3 = vcmask 1039360   ;;  %vm526_vm4 = vcmask 900096   ;;  %vm571_vm5 = vcmask 891904   ;;  %v790_v52 = vld [vmem:[%s2640_s5] sm:$0xff] }
  0x1b   : > { %s2644_s0 = sshll.u32 %s2179_s27, 1  ;;  %vm616_vm6 = vcmask 883712   ;;  %vm661_vm7 = vcmask 752640   ;;  %vm706_vm8 = vcmask 744448   ;;  %v2038_v55 = vmov 0  }
  0x1c   : > { %v389_v2 = vpack.c.b16 %v388_v1, %v388_v1  ;;  %s1753_s15 = sshll.u32 %s367_s28, 2  ;;  %s2022_s28 = smov 127   ;;  %1910 = vset.pattern.permute.xlu2 %v2038_v55  ;;  %1916 = vset.pattern.permute.xlu0 %v2038_v55  ;;  %vm751_vm9 = vcmask 736256   ;;  %vm853_vm10 = vcmask 154624   ;;  %vm859_vm11 = vcmask 150528  }
  0x1d   : > { %s2185_s21 = sadd.s32 %s1753_s15, %s2644_s0  ;;  %s2023_s15 = smov 126   ;;  %vm862_vm12 = vcmask 1044024   ;;  %860 = vst.msk [vmem:[#allocation2] sm:$0xf] %vm859_vm11, %v2038_v55 }
  0x1e   : > { %390 = vrot.lane.b32.xlu1 %v389_v2, %s2021_s18  ;;  %s2648_s22 = sshll.u32 %s2185_s21, 2  ;;  %s2645_s18 = smov 110   ;;  %863 = vst.msk [vmem:[#allocation2 + $0x4] sm:$0xf] %vm862_vm12, %v2038_v55 }
  0x1f   : > { %s374_s26 = scalar_lea.vmem %s2662_s2, %s2648_s22  ;;  %s2647_s0 = smov 112   ;;  %861 = vst.msk [vmem:[#allocation2 + $0x8] sm:$0xf] %vm859_vm11, %v2038_v55 }
  0x20   : > { %v2193_v3 = vld [vmem:[%s374_s26] sm:$0xff]  ;;  %s2650_s26 = smov 108   ;;  %s2034_s22 = smov 90   ;;  %864 = vst.msk [vmem:[#allocation2 + $0xc] sm:$0xf] %vm862_vm12, %v2038_v55  ;;  %vm885_vm12 = vcmask 1043608  }
  0x21   : > { %v393_v4 = vunpack.c.l.b16 %v2193_v3  ;;  %v394_v5 = vunpack.c.h.b16 %v2193_v3  ;;  %v836_v53 = vunpack.c.l.bf16 %v2193_v3  ;;  %v837_v54 = vunpack.c.h.bf16 %v2193_v3  ;;  %s2669_s2 = smov 92  }
  0x23   : > { %v395_v6 = vpack.c.b16 %v393_v4, %v393_v4  ;;  %v396_v7 = vpack.c.b16 %v394_v5, %v394_v5  ;;  %v1911_v58 = vpack.i.bf16 %v837_v54, %v836_v53 }
  0x25   : > { %397 = vrot.lane.b32.xlu0 %v395_v6, %s2022_s28  ;;  %479 = vrot.lane.b32.xlu2 %v396_v7, %s2023_s15  ;;  %v444_v11 = vsel %vm407_vm0, %v395_v6, 0  ;;  %v447_v12 = vsel %vm407_vm0, %v396_v7, 0 }
  0x26   : > { %477 = vrot.lane.b32.xlu1 %v395_v6, %s2023_s15  ;;  %s2649_s15 = smov 96   ;;  %456 = vmatpush.bf16.msra.mxu2 %v444_v11 }
  0x27   : > { %469 = vmatpush.bf16.msra.mxu3 %v447_v12 }
  0x29   : > { %1760 = vmatmul.msk.bf16.vlgmr.msra.gmra.mxu2 %vm403_vm1, %v2175_v0 }
  0x2a   : > { %1761 = vmatmul.msk.bf16.vlgmr.msra.gmra.mxu3 %vm403_vm1, %v2175_v0 }
  0x2d   : > { %399 = vrot.lane.b32.xlu0 %v396_v7, %s2022_s28  ;;  %475 = vrot.lane.b32.xlu2 %v389_v2, %s2647_s0  ;;  %s2654_s28 = smov 92   ;;  %s2032_s0 = smov 91  }
  0x2e   : > { %524 = vrot.lane.b32.xlu1 %v396_v7, %s2645_s18 }
  0x35   : > { %522 = vrot.lane.b32.xlu0 %v395_v6, %s2645_s18  ;;  %520 = vrot.lane.b32.xlu2 %v389_v2, %s2027_s25  ;;  %s2031_s18 = smov 88   ;;  %s2656_s25 = smov 80  }
  0x36   : > { %569 = vrot.lane.b32.xlu1 %v396_v7, %s2652_s23 }
  0x3d   : > { %567 = vrot.lane.b32.xlu0 %v395_v6, %s2652_s23  ;;  %565 = vrot.lane.b32.xlu2 %v389_v2, %s2649_s15  ;;  %s2657_s15 = smov 72   ;;  %s841_s23 = sld [smem:[#allocation3]] }
  0x3e   : > { %614 = vrot.lane.b32.xlu1 %v396_v7, %s2650_s26 }
  0x43   : > { %v842_v3 = vstv %s841_s23  ;;  %s2666_s23 = smov 112  }
  0x45   : > { %612 = vrot.lane.b32.xlu0 %v395_v6, %s2650_s26  ;;  %610 = vrot.lane.b32.xlu2 %v389_v2, %s2031_s18  ;;  %s2663_s26 = sshll.u32 %s2179_s27, 1  ;;  %s2670_s27 = smov 110  }
  0x46   : > { %659 = vrot.lane.b32.xlu1 %v396_v7, %s2654_s28  ;;  %s365_s18 = scalar_lea.vmem %s2636_s1, %s2663_s26  ;;  %s2664_s26 = smov 109  }
  0x47   : > { %v845_v8 = vld [vmem:[%s365_s18] sm:$0x3]  ;;  %s2665_s18 = sshll.u32 %s2185_s21, 2  ;;  %s2039_s21 = smov 74  }
  0x48   : > { %v847_v9 = vperm.slane %v845_v8, 0  ;;  %v848_v10 = vperm.slane %v845_v8, 1 }
  0x4d   : > { %657 = vrot.lane.b32.xlu0 %v395_v6, %s2654_s28  ;;  %655 = vrot.lane.b32.xlu2 %v389_v2, %s2656_s25  ;;  %s2036_s28 = smov 64   ;;  %s2037_s25 = smov 19  }
  0x4e   : > { %704 = vrot.lane.b32.xlu1 %v396_v7, %s2032_s0 }
  0x55   : > { %702 = vrot.lane.b32.xlu0 %v395_v6, %s2032_s0  ;;  %700 = vrot.lane.b32.xlu2 %v389_v2, %s2657_s15  ;;  %s383_s15 = scalar_lea.vmem %s2638_s3, %s2665_s18  ;;  %s2667_s18 = smov 96  }
  0x56   : > { %749 = vrot.lane.b32.xlu1 %v396_v7, %s2034_s22  ;;  %v838_v62 = vld [vmem:[%s383_s15] sm:$0xff]  ;;  %s2672_s15 = smov 72  }
  0x57   : > { %v839_v1 = vunpack.c.l.bf16 %v838_v62  ;;  %v840_v8 = vunpack.c.h.bf16 %v838_v62 }
  0x59   : > { %v843_v4 = vmul.f32 %v842_v3, %v839_v1 }
  0x5d   : > { %747 = vrot.lane.b32.xlu0 %v395_v6, %s2034_s22  ;;  %745 = vrot.lane.b32.xlu2 %v389_v2, %s2036_s28 }
  0x5e   : > { %851 = vrot.lane.b32.xlu1 %v848_v10, %s2037_s25 }
  0x65   : > { %849 = vrot.lane.b32.xlu0 %v847_v9, %s2037_s25  ;;  %793 = vperm.xlu2 %1910, %v790_v52   ;;  %v844_v9 = vmul.f32 %v842_v3, %v840_v8 }
  0x6d   : > { %1912 = vrot.lane.b32.xlu0 %v1911_v58, %s2664_s26 }
  0x7f   : > { %v480_v13 = vpop.permute.xlu2 %479 }
  0x80   : > { %v490_v22 = vsel %vm407_vm0, %v480_v13, 0 }
  0x87   : > { %v476_v15 = vpop.permute.xlu2 %475 }
  0x8f   : > { %v521_v18 = vpop.permute.xlu2 %520 }
  0x90   : > { %v391_v14 = vpop.permute.xlu1 %390 }
  0x97   : > { %v398_v16 = vpop.permute.xlu0 %397  ;;  %v566_v28 = vpop.permute.xlu2 %565 }
  0x98   : > { %v478_v17 = vpop.permute.xlu1 %477 }
  0x99   : > { %v482_v19 = vsel %vm481_vm2, %v478_v17, %v480_v13 }
  0x9a   : > { %v487_v26 = vsel %vm407_vm0, %v482_v19, 0 }
  0x9f   : > { %v400_v20 = vpop.permute.xlu0 %399  ;;  %v611_v34 = vpop.permute.xlu2 %610 }
  0xa0   : > { %v525_v21 = vpop.permute.xlu1 %524  ;;  %v412_v23 = vsel %vm407_vm0, %v400_v20, 0  ;;  %v402_v24 = vsel %vm401_vm3, %v398_v16, %v400_v20 }
  0xa1   : > { %v535_v25 = vsel %vm407_vm0, %v525_v21, 0  ;;  %434 = vmatpush.bf16.msra.mxu1 %v412_v23  ;;  %v409_v27 = vsel %vm407_vm0, %v402_v24, 0 }
  0xa2   : > { %557 = vmatpush.bf16.msrb.mxu3 %v535_v25  ;;  %421 = vmatpush.bf16.msra.mxu0 %v409_v27 }
  0xa4   : > { %1759 = vmatmul.msk.bf16.vlgmr.msra.gmra.mxu1 %vm403_vm1, %v391_v14 }
  0xa5   : > { %512 = vmatpush.bf16.msrb.mxu1 %v490_v22  ;;  %1765 = vmatmul.msk.bf16.vlgmr.msrb.gmra.mxu3 %vm403_vm1, %v521_v18 }
  0xa6   : > { %499 = vmatpush.bf16.msrb.mxu0 %v487_v26 }
  0xa7   : > { %1758 = vmatmul.msk.bf16.vlgmr.msra.gmra.mxu0 %vm403_vm1, %v391_v14  ;;  %v523_v29 = vpop.permute.xlu0 %522  ;;  %v656_v40 = vpop.permute.xlu2 %655 }
  0xa8   : > { %v570_v30 = vpop.permute.xlu1 %569  ;;  %v527_v31 = vsel %vm526_vm4, %v523_v29, %v525_v21 }
  0xa9   : > { %v580_v32 = vsel %vm407_vm0, %v570_v30, 0  ;;  %v532_v33 = vsel %vm407_vm0, %v527_v31, 0 }
  0xaa   : > { %602 = vmatpush.bf16.msra.mxu1 %v580_v32  ;;  %544 = vmatpush.bf16.msrb.mxu2 %v532_v33 }
  0xac   : > { %v458_v13 = vpop.f32.mrf.mxu2 }
  0xad   : > { %1764 = vmatmul.msk.bf16.vlgmr.msrb.gmra.mxu2 %vm403_vm1, %v521_v18  ;;  %v471_v14 = vpop.f32.mrf.mxu3 }
  0xaf   : > { %v568_v35 = vpop.permute.xlu0 %567  ;;  %v701_v51 = vpop.permute.xlu2 %700 }
  0xb0   : > { %v615_v36 = vpop.permute.xlu1 %614  ;;  %v572_v37 = vsel %vm571_vm5, %v568_v35, %v570_v30 }
  0xb1   : > { %v625_v38 = vsel %vm407_vm0, %v615_v36, 0  ;;  %v577_v39 = vsel %vm407_vm0, %v572_v37, 0 }
  0xb2   : > { %647 = vmatpush.bf16.msra.mxu3 %v625_v38  ;;  %589 = vmatpush.bf16.msra.mxu0 %v577_v39 }
  0xb4   : > { %1763 = vmatmul.msk.bf16.vlgmr.msrb.gmra.mxu1 %vm403_vm1, %v476_v15  ;;  %v460_v16 = vpop.f32.mrf.mxu2 }
  0xb5   : > { %1769 = vmatmul.msk.bf16.vlgmr.msra.gmra.mxu3 %vm403_vm1, %v611_v34 }
  0xb7   : > { %1762 = vmatmul.msk.bf16.vlgmr.msrb.gmra.mxu0 %vm403_vm1, %v476_v15  ;;  %v613_v41 = vpop.permute.xlu0 %612  ;;  %v746_v7 = vpop.permute.xlu2 %745 }
  0xb8   : > { %v660_v42 = vpop.permute.xlu1 %659  ;;  %v617_v43 = vsel %vm616_vm6, %v613_v41, %v615_v36  ;;  %v473_v15 = vpop.f32.mrf.mxu3 }
  0xb9   : > { %v670_v44 = vsel %vm407_vm0, %v660_v42, 0  ;;  %v622_v45 = vsel %vm407_vm0, %v617_v43, 0 }
  0xba   : > { %692 = vmatpush.bf16.msrb.mxu1 %v670_v44  ;;  %634 = vmatpush.bf16.msra.mxu2 %v622_v45 }
  0xbd   : > { %1768 = vmatmul.msk.bf16.vlgmr.msra.gmra.mxu2 %vm403_vm1, %v611_v34 }
  0xbf   : > { %v658_v46 = vpop.permute.xlu0 %657 }
  0xc0   : > { %v705_v47 = vpop.permute.xlu1 %704  ;;  %v662_v48 = vsel %vm661_vm7, %v658_v46, %v660_v42 }
  0xc1   : > { %v715_v49 = vsel %vm407_vm0, %v705_v47, 0  ;;  %v667_v50 = vsel %vm407_vm0, %v662_v48, 0 }
  0xc2   : > { %737 = vmatpush.bf16.msrb.mxu3 %v715_v49  ;;  %679 = vmatpush.bf16.msrb.mxu0 %v667_v50 }
  0xc4   : > { %1767 = vmatmul.msk.bf16.vlgmr.msra.gmra.mxu1 %vm403_vm1, %v566_v28 }
  0xc5   : > { %1773 = vmatmul.msk.bf16.vlgmr.msrb.gmra.mxu3 %vm403_vm1, %v701_v51 }
  0xc7   : > { %1766 = vmatmul.msk.bf16.vlgmr.msra.gmra.mxu0 %vm403_vm1, %v566_v28  ;;  %v703_v56 = vpop.permute.xlu0 %702 }
  0xc8   : > { %v750_v57 = vpop.permute.xlu1 %749  ;;  %v707_v59 = vsel %vm706_vm8, %v703_v56, %v705_v47 }
  0xc9   : > { %v760_v60 = vsel %vm407_vm0, %v750_v57, 0  ;;  %v712_v61 = vsel %vm407_vm0, %v707_v59, 0 }
  0xca   : > { %782 = vmatpush.bf16.msra.mxu1 %v760_v60  ;;  %724 = vmatpush.bf16.msrb.mxu2 %v712_v61  ;;  %v794_v61 = vpop.permute.xlu2 %793 }
  0xcd   : > { %1772 = vmatmul.msk.bf16.vlgmr.msrb.gmra.mxu2 %vm403_vm1, %v701_v51 }
  0xcf   : > { %v748_v63 = vpop.permute.xlu0 %747 }
  0xd0   : > { %v752_v0 = vsel %vm751_vm9, %v748_v63, %v750_v57  ;;  %v852_v10 = vpop.permute.xlu1 %851 }
  0xd1   : > { %v757_v2 = vsel %vm407_vm0, %v752_v0, 0 }
  0xd2   : > { %769 = vmatpush.bf16.msra.mxu0 %v757_v2 }
  0xd4   : > { %1771 = vmatmul.msk.bf16.vlgmr.msrb.gmra.mxu1 %vm403_vm1, %v656_v40 }
  0xd7   : > { %1770 = vmatmul.msk.bf16.vlgmr.msrb.gmra.mxu0 %vm403_vm1, %v656_v40  ;;  %v850_v5 = vpop.permute.xlu0 %849 }
  0xd8   : > { %v857_v6 = vadd.f32 %v850_v5, %v843_v4  ;;  %v854_v11 = vsel %vm853_vm10, %v850_v5, %v852_v10 }
  0xd9   : > { %v858_v12 = vadd.f32 %v854_v11, %v844_v9 }
  0xda   : > { %893 = vrot.lane.b32.xlu1 %v857_v6, %s2664_s26 }
  0xdb   : > { %895 = vrot.lane.b32.xlu2 %v858_v12, %s2664_s26 }
  0xdf   : > { %v1913_v16 = vpop.permute.xlu0 %1912 }
  0xe4   : > { %1775 = vmatmul.msk.bf16.vlgmr.msra.gmra.mxu1 %vm403_vm1, %v746_v7 }
  0xe7   : > { %1774 = vmatmul.msk.bf16.vlgmr.msra.gmra.mxu0 %vm403_vm1, %v746_v7 }
 0x121   : > { %v436_v17 = vpop.f32.mrf.mxu1 }
 0x122   : > { %v472_v38 = vadd.f32 %v471_v14, %v436_v17 }
 0x124   : > { %v423_v18 = vpop.f32.mrf.mxu0 }
 0x125   : > { %v459_v39 = vadd.f32 %v458_v13, %v423_v18 }
 0x128   : > { %v559_v19 = vpop.f32.mrf.mxu3 }
 0x129   : > { %v438_v20 = vpop.f32.mrf.mxu1 }
 0x12c   : > { %v425_v21 = vpop.f32.mrf.mxu0 }
 0x12d   : > { %v1915_v21 = vunpack.i.h.bf16 %v1913_v16 }
 0x130   : > { %v561_v22 = vpop.f32.mrf.mxu3  ;;  %v546_v23 = vpop.f32.mrf.mxu2 }
 0x131   : > { %v514_v24 = vpop.f32.mrf.mxu1  ;;  %v1914_v22 = vunpack.i.l.bf16 %v1913_v16 }
 0x132   : > { %v519_v41 = vadd.f32 %v514_v24, %v472_v38 }
 0x134   : > { %v501_v25 = vpop.f32.mrf.mxu0  ;;  %v564_v46 = vadd.f32 %v559_v19, %v519_v41 }
 0x135   : > { %v518_v43 = vadd.f32 %v501_v25, %v459_v39 }
 0x137   : > { %v563_v47 = vadd.f32 %v546_v23, %v518_v43 }
 0x138   : > { %v649_v26 = vpop.f32.mrf.mxu3  ;;  %v548_v27 = vpop.f32.mrf.mxu2 }
 0x139   : > { %v516_v28 = vpop.f32.mrf.mxu1 }
 0x13c   : > { %v503_v29 = vpop.f32.mrf.mxu0 }
 0x140   : > { %v651_v30 = vpop.f32.mrf.mxu3  ;;  %v636_v31 = vpop.f32.mrf.mxu2 }
 0x141   : > { %v604_v32 = vpop.f32.mrf.mxu1 }
 0x142   : > { %v609_v48 = vadd.f32 %v604_v32, %v564_v46  ;;  %v872_v32 = vsel %vm571_vm5, %v1914_v22, %v1915_v21  ;;  %v2290_v46 = vld [vmem:[%s2641_s6] sm:$0xf] }
 0x144   : > { %v591_v33 = vpop.f32.mrf.mxu0  ;;  %v654_v52 = vadd.f32 %v649_v26, %v609_v48  ;;  %v914_v48 = vunpack.c.l.b16 %v2290_v46 }
 0x145   : > { %v608_v49 = vadd.f32 %v591_v33, %v563_v47 }
 0x147   : > { %v653_v54 = vadd.f32 %v636_v31, %v608_v49  ;;  %v915_v49 = vpack.c.b16 %v914_v48, %v914_v48 }
 0x148   : > { %v739_v34 = vpop.f32.mrf.mxu3  ;;  %v638_v35 = vpop.f32.mrf.mxu2 }
 0x149   : > { %v606_v36 = vpop.f32.mrf.mxu1 }
 0x14a   : > { %v896_v36 = vpop.permute.xlu2 %895 }
 0x14c   : > { %v593_v37 = vpop.f32.mrf.mxu0  ;;  %v894_v33 = vpop.permute.xlu1 %893 }
 0x150   : > { %v741_v40 = vpop.f32.mrf.mxu3  ;;  %v726_v42 = vpop.f32.mrf.mxu2 }
 0x151   : > { %v694_v44 = vpop.f32.mrf.mxu1 }
 0x152   : > { %v699_v56 = vadd.f32 %v694_v44, %v654_v52 }
 0x154   : > { %v681_v45 = vpop.f32.mrf.mxu0  ;;  %v744_v58 = vadd.f32 %v739_v34, %v699_v56 }
 0x155   : > { %v698_v57 = vadd.f32 %v681_v45, %v653_v54 }
 0x157   : > { %v743_v59 = vadd.f32 %v726_v42, %v698_v57  ;;  %v897_v42 = vsel %vm571_vm5, %v894_v33, %v896_v36 }
 0x158   : > { %v728_v50 = vpop.f32.mrf.mxu2 }
 0x159   : > { %v696_v51 = vpop.f32.mrf.mxu1 }
 0x15c   : > { %v683_v53 = vpop.f32.mrf.mxu0 }
 0x161   : > { %v784_v60 = vpop.f32.mrf.mxu1 }
 0x162   : > { %v789_v62 = vadd.f32 %v784_v60, %v744_v58 }
 0x164   : > { %v771_v63 = vpop.f32.mrf.mxu0  ;;  %v797_v1 = vadd.f32 %v794_v61, %v789_v62 }
 0x165   : > { %v788_v0 = vadd.f32 %v771_v63, %v743_v59 }
 0x166   : > { %v799_v3 = vsub.f32 0.0, %v797_v1 }
 0x167   : > { %v796_v2 = vadd.f32 %v794_v61, %v788_v0 }
 0x168   : > { %v802_v5 = vmul.f32 1.442695, %v799_v3 }
 0x169   : > { %v798_v4 = vsub.f32 0.0, %v796_v2  ;;  %v786_v7 = vpop.f32.mrf.mxu1 }
 0x16a   : > { %1917 = vpow2.f32 %v802_v5 }
 0x16b   : > { %v800_v6 = vmul.f32 1.442695, %v798_v4 }
 0x16c   : > { %v773_v8 = vpop.f32.mrf.mxu0 }
 0x16d   : > { %1919 = vpow2.f32 %v800_v6 }
 0x170   : > { %v1918_v9 = vpop.eup %1917 }
 0x171   : > { %v805_v11 = vadd.f32 1.0, %v1918_v9 }
 0x173   : > { %v1920_v10 = vpop.eup %1919  ;;  %1921 = vrcp.f32 %v805_v11  ;;  %v832_v20 = vand.u32 2147483648, %v805_v11  ;;  %v830_v25 = vand.u32 2147483647, %v805_v11  ;;  %vm826_vm15 = vweird.f32 %v805_v11 }
 0x174   : > { %v804_v12 = vadd.f32 1.0, %v1920_v10 }
 0x175   : > { %v833_v55 = vor.u32 1.1754944e-38, %v832_v20  ;;  %vm831_vm3 = vcmp.eq.f32.partialorder %v830_v25, 8.507059e+37 }
 0x176   : > { %1923 = vrcp.f32 %v804_v12  ;;  %v817_v23 = vand.u32 2147483648, %v804_v12  ;;  %v815_v27 = vand.u32 2147483647, %v804_v12  ;;  %vm811_vm0 = vweird.f32 %v804_v12 }
 0x178   : > { %v818_v30 = vor.u32 1.1754944e-38, %v817_v23  ;;  %vm816_vm11 = vcmp.eq.f32.partialorder %v815_v27, 8.507059e+37  ;;  %v1281_v27 = vld [vmem:[%s2642_s7] sm:$0xff] }
 0x179   : > { %v1922_v13 = vpop.eup %1921 }
 0x17a   : > { %v822_v15 = vmul.f32 %v1922_v13, %v805_v11  ;;  %vm827_vm13 = vweird.f32 %v1922_v13 }
 0x17b   : > { %vm828_vm1 = vmor %vm826_vm15, %vm827_vm13  ;;  %vm886_vm13 = vcmask 580612   ;;  %vm1523_vm15 = vcmask 1043459  }
 0x17c   : > { %v1924_v14 = vpop.eup %1923  ;;  %v823_v18 = vsub.f32 1.0, %v822_v15 }
 0x17d   : > { %v807_v17 = vmul.f32 %v1924_v14, %v804_v12  ;;  %vm812_vm14 = vweird.f32 %v1924_v14 }
 0x17e   : > { %v824_v24 = vmul.f32 %v1922_v13, %v823_v18  ;;  %vm813_vm2 = vmor %vm811_vm0, %vm812_vm14  ;;  %vm1517_vm0 = vcmask 1041409  }
 0x17f   : > { %v808_v19 = vsub.f32 1.0, %v807_v17  ;;  %vm887_vm14 = vmor %vm886_vm13, %vm885_vm12  ;;  %vm1586_vm12 = vcmask 15360  }
 0x180   : > { %v825_v28 = vadd.f32 %v1922_v13, %v824_v24 }
 0x181   : > { %v809_v26 = vmul.f32 %v1924_v14, %v808_v19 }
 0x182   : > { %v829_v31 = vsel %vm828_vm1, %v1922_v13, %v825_v28  ;;  %vm1529_vm1 = vcmask 1045509  }
 0x183   : > { %v810_v29 = vadd.f32 %v1924_v14, %v809_v26  ;;  %v834_v35 = vsel %vm831_vm3, %v833_v55, %v829_v31  ;;  %v1241_v55 = vld [vmem:[%s2641_s6 + $0x4] sm:$0xf]  ;;  %vm1526_vm3 = vcmask 1044484  }
 0x184   : > { %v890_v38 = vsub.f32 1.0, %v834_v35  ;;  %v876_v39 = vmul.f32 %v1915_v21, %v834_v35 }
 0x185   : > { %v814_v34 = vsel %vm813_vm2, %v1924_v14, %v810_v29  ;;  %vm1532_vm2 = vcmask 1046534  }
 0x186   : > { %v819_v37 = vsel %vm816_vm11, %v818_v30, %v814_v34  ;;  %v901_v43 = vmul.f32 %v896_v36, %v890_v38  ;;  %vm1535_vm11 = vcmask 1046528  }
 0x187   : > { %v889_v40 = vsub.f32 1.0, %v819_v37  ;;  %v875_v41 = vmul.f32 %v872_v32, %v819_v37 }
 0x189   : > { %v900_v44 = vmul.f32 %v897_v42, %v889_v40  ;;  %v877_v45 = vpack.c.bf16 %v876_v39, %v875_v41 }
 0x18b   : > { %v902_v47 = vpack.c.bf16 %v901_v43, %v900_v44  ;;  %879 = vrot.lane.b32.xlu0 %v877_v45, %s2037_s25 }
 0x18d   : > { %904 = vrot.lane.b32.xlu1 %v902_v47, %s2037_s25  ;;  %s2668_s25 = smov 108  }
 0x195   : > { %916 = vrot.lane.b32.xlu1 %v915_v49, %s2666_s23  ;;  %s2040_s23 = smov 32  }
 0x19d   : > { %999 = vrot.lane.b32.xlu1 %v915_v49, %s2667_s18  ;;  %s2041_s18 = smov 73  }
 0x1fd   : > { %v880_v50 = vpop.permute.xlu0 %879 }
 0x1fe   : > { %v881_v51 = vrot.slane %v880_v50, 4 }
 0x1ff   : > { %v905_v52 = vpop.permute.xlu1 %904 }
 0x200   : > { %v883_v53 = vsel %vm853_vm10, %v881_v51, %v880_v50  ;;  %v906_v54 = vrot.slane %v905_v52, 4 }
 0x201   : > { %888 = vst.msk [vmem:[#allocation2] sm:$0xff] %vm887_vm14, %v883_v53 }
 0x202   : > { %v907_v56 = vsel %vm853_vm10, %v906_v54, %v905_v52  ;;  %vm933_vm10 = vcmask 130048  }
 0x203   : > { %909 = vst.msk [vmem:[#allocation2 + $0x8] sm:$0xff] %vm887_vm14, %v907_v56 }
 0x207   : > { %v917_v0 = vpop.permute.xlu1 %916 }
 0x208   : > { %v1807_v57 = vld [vmem:[#allocation2 + $0x4] sm:$0xf]  ;;  %v1778_v58 = vld [vmem:[#allocation2] sm:$0xf] }
 0x20a   : > { %v1780_v59 = vld [vmem:[#allocation2 + $0x8] sm:$0xf0]  ;;  %v1808_v60 = vld [vmem:[#allocation2 + $0x4] sm:$0xf0] }
 0x20b   : > { %v1779_v61 = vor.u32 %v1808_v60, %v1778_v58  ;;  %v1783_v62 = vor.u32 %v1807_v57, %v1780_v59 }
 0x20d   : > { %926 = vrot.lane.b32.xlu0 %v1779_v61, %s2664_s26  ;;  %1083 = vrot.lane.b32.xlu1 %v1783_v62, %s2032_s0 }
 0x20e   : > { %928 = vrot.lane.b32.xlu2 %v1783_v62, %s2664_s26  ;;  %s2671_s26 = smov 80  }
 0x20f   : > { %v1000_v2 = vpop.permute.xlu1 %999 }
 0x215   : > { %1001 = vrot.lane.b32.xlu0 %v1779_v61, %s2668_s25  ;;  %1043 = vrot.lane.b32.xlu1 %v1783_v62, %s2669_s2 }
 0x216   : > { %1003 = vrot.lane.b32.xlu2 %v1783_v62, %s2668_s25  ;;  %s2042_s25 = smov 48  }
 0x21d   : > { %963 = vrot.lane.b32.xlu0 %v1779_v61, %s2670_s27  ;;  %1163 = vrot.lane.b32.xlu1 %v1783_v62, %s2039_s21 }
 0x21e   : > { %965 = vrot.lane.b32.xlu2 %v1783_v62, %s2670_s27 }
 0x225   : > { %1079 = vrot.lane.b32.xlu0 %v915_v49, %s2036_s28  ;;  %1123 = vrot.lane.b32.xlu1 %v1783_v62, %s2034_s22  ;;  %s2046_s28 = smov 38  }
 0x226   : > { %1081 = vrot.lane.b32.xlu2 %v1779_v61, %s2032_s0  ;;  %s2043_s0 = smov 16  }
 0x22d   : > { %1039 = vrot.lane.b32.xlu0 %v915_v49, %s2671_s26  ;;  %1244 = vrot.lane.b32.xlu1 %v1783_v62, %s2672_s15 }
 0x22e   : > { %1041 = vrot.lane.b32.xlu2 %v1779_v61, %s2669_s2 }
 0x235   : > { %1159 = vrot.lane.b32.xlu0 %v915_v49, %s2040_s23  ;;  %1202 = vrot.lane.b32.xlu1 %v1779_v61, %s2041_s18  ;;  %s359_s23 = sand.u32 1, %s1995_s30  }
 0x236   : > { %1161 = vrot.lane.b32.xlu2 %v1779_v61, %s2039_s21 }
 0x23d   : > { %1119 = vrot.lane.b32.xlu0 %v915_v49, %s2042_s25 }
 0x23e   : > { %1121 = vrot.lane.b32.xlu2 %v1779_v61, %s2034_s22  ;;  %s2045_s22 = smov 20  }
 0x245   : > { %1204 = vrot.lane.b32.xlu0 %v1783_v62, %s2041_s18  ;;  %s1750_s18 = sshll.u32 %s359_s23, 6 }
 0x246   : > { %1242 = vrot.lane.b32.xlu2 %v1779_v61, %s2672_s15  ;;  %s2352_s25 = scalar_lea.vmem [#allocation4], %s1750_s18 }
 0x24d   : > { %1284 = vperm.xlu0 %1916, %v1281_v27  }
 0x24e   : > { %1200 = vrot.lane.b32.xlu2 %v915_v49, %s2043_s0  ;;  %s2044_s0 = smov 56  }
 0x268   : > { %v929_v63 = vpop.permute.xlu2 %928 }
 0x269   : > { %957 = vmatpush.bf16.msra.mxu3 %v929_v63 }
 0x26c   : > { %1785 = vmatmul.msk.bf16.vlgmr.msra.gmra.mxu3 %vm933_vm10, %v917_v0 }
 0x270   : > { %v1004_v1 = vpop.permute.xlu2 %1003 }
 0x271   : > { %1031 = vmatpush.bf16.msrb.mxu3 %v1004_v1 }
 0x278   : > { %v966_v3 = vpop.permute.xlu2 %965 }
 0x279   : > { %993 = vmatpush.bf16.msrb.mxu1 %v966_v3 }
 0x27c   : > { %1789 = vmatmul.msk.bf16.vlgmr.msrb.gmra.mxu3 %vm933_vm10, %v1000_v2  ;;  %1787 = vmatmul.msk.bf16.vlgmr.msrb.gmra.mxu1 %vm933_vm10, %v2290_v46 }
 0x27f   : > { %v927_v4 = vpop.permute.xlu0 %926  ;;  %v1084_v5 = vpop.permute.xlu1 %1083 }
 0x280   : > { %v930_v6 = vsel %vm571_vm5, %v927_v4, %v929_v63  ;;  %v1082_v7 = vpop.permute.xlu2 %1081  ;;  %1111 = vmatpush.bf16.msra.mxu3 %v1084_v5  ;;  %vm1165_vm5 = vcmask 605184  }
 0x281   : > { %944 = vmatpush.bf16.msra.mxu2 %v930_v6  ;;  %v1085_v12 = vsel %vm706_vm8, %v1082_v7, %v1084_v5  ;;  %vm1515_vm8 = vcmask 1040384  }
 0x284   : > { %1784 = vmatmul.msk.bf16.vlgmr.msra.gmra.mxu2 %vm933_vm10, %v917_v0 }
 0x287   : > { %v1002_v8 = vpop.permute.xlu0 %1001  ;;  %v1044_v9 = vpop.permute.xlu1 %1043 }
 0x288   : > { %v1005_v10 = vsel %vm616_vm6, %v1002_v8, %v1004_v1  ;;  %v1042_v11 = vpop.permute.xlu2 %1041  ;;  %1071 = vmatpush.bf16.msra.mxu1 %v1044_v9  ;;  %vm1206_vm6 = vcmask 596992  }
 0x289   : > { %1018 = vmatpush.bf16.msrb.mxu2 %v1005_v10  ;;  %v1045_v17 = vsel %vm661_vm7, %v1042_v11, %v1044_v9  ;;  %vm1304_vm7 = vcmask 139264  }
 0x28d   : > { %1098 = vmatpush.bf16.msra.mxu2 %v1085_v12 }
 0x28f   : > { %v964_v13 = vpop.permute.xlu0 %963  ;;  %v1164_v14 = vpop.permute.xlu1 %1163 }
 0x290   : > { %v967_v15 = vsel %vm526_vm4, %v964_v13, %v966_v3  ;;  %v1162_v16 = vpop.permute.xlu2 %1161  ;;  %1192 = vmatpush.bf16.msrb.mxu3 %v1164_v14  ;;  %vm1246_vm4 = vcmask 588800  }
 0x291   : > { %980 = vmatpush.bf16.msrb.mxu0 %v967_v15  ;;  %v1166_v18 = vsel %vm1165_vm5, %v1162_v16, %v1164_v14 }
 0x294   : > { %1786 = vmatmul.msk.bf16.vlgmr.msrb.gmra.mxu0 %vm933_vm10, %v2290_v46  ;;  %1788 = vmatmul.msk.bf16.vlgmr.msrb.gmra.mxu2 %vm933_vm10, %v1000_v2 }
 0x295   : > { %1058 = vmatpush.bf16.msra.mxu0 %v1045_v17  ;;  %1179 = vmatpush.bf16.msrb.mxu2 %v1166_v18 }
 0x297   : > { %v1080_v19 = vpop.permute.xlu0 %1079  ;;  %v1124_v20 = vpop.permute.xlu1 %1123 }
 0x298   : > { %v1122_v21 = vpop.permute.xlu2 %1121  ;;  %1151 = vmatpush.bf16.msrb.mxu1 %v1124_v20  ;;  %1793 = vmatmul.msk.bf16.vlgmr.msra.gmra.mxu3 %vm933_vm10, %v1080_v19 }
 0x299   : > { %v1125_v22 = vsel %vm751_vm9, %v1122_v21, %v1124_v20  ;;  %vm1520_vm9 = vcmask 1042434  }
 0x29a   : > { %1138 = vmatpush.bf16.msrb.mxu0 %v1125_v22 }
 0x29f   : > { %v1040_v23 = vpop.permute.xlu0 %1039  ;;  %v1245_v24 = vpop.permute.xlu1 %1244 }
 0x2a0   : > { %1791 = vmatmul.msk.bf16.vlgmr.msra.gmra.mxu1 %vm933_vm10, %v1040_v23  ;;  %1273 = vmatpush.bf16.msra.mxu3 %v1245_v24  ;;  %v1243_v25 = vpop.permute.xlu2 %1242 }
 0x2a1   : > { %v1247_v26 = vsel %vm1246_vm4, %v1243_v25, %v1245_v24 }
 0x2a4   : > { %1790 = vmatmul.msk.bf16.vlgmr.msra.gmra.mxu0 %vm933_vm10, %v1040_v23  ;;  %1792 = vmatmul.msk.bf16.vlgmr.msra.gmra.mxu2 %vm933_vm10, %v1080_v19 }
 0x2a5   : > { %1260 = vmatpush.bf16.msra.mxu2 %v1247_v26 }
 0x2a7   : > { %v1160_v28 = vpop.permute.xlu0 %1159  ;;  %v1203_v30 = vpop.permute.xlu1 %1202 }
 0x2a8   : > { %1797 = vmatmul.msk.bf16.vlgmr.msrb.gmra.mxu3 %vm933_vm10, %v1160_v28  ;;  %v1201_v33 = vpop.permute.xlu2 %1200 }
 0x2af   : > { %v1120_v29 = vpop.permute.xlu0 %1119 }
 0x2b0   : > { %1795 = vmatmul.msk.bf16.vlgmr.msrb.gmra.mxu1 %vm933_vm10, %v1120_v29 }
 0x2b4   : > { %1794 = vmatmul.msk.bf16.vlgmr.msrb.gmra.mxu0 %vm933_vm10, %v1120_v29  ;;  %1796 = vmatmul.msk.bf16.vlgmr.msrb.gmra.mxu2 %vm933_vm10, %v1160_v28 }
 0x2b7   : > { %v1205_v31 = vpop.permute.xlu0 %1204 }
 0x2b8   : > { %v1207_v32 = vsel %vm1206_vm6, %v1203_v30, %v1205_v31  ;;  %1233 = vmatpush.bf16.msra.mxu1 %v1205_v31  ;;  %1801 = vmatmul.msk.bf16.vlgmr.msra.gmra.mxu3 %vm933_vm10, %v1241_v55 }
 0x2b9   : > { %1220 = vmatpush.bf16.msra.mxu0 %v1207_v32 }
 0x2bf   : > { %v1285_v17 = vpop.permute.xlu0 %1284 }
 0x2c0   : > { %1799 = vmatmul.msk.bf16.vlgmr.msra.gmra.mxu1 %vm933_vm10, %v1201_v33 }
 0x2c4   : > { %1798 = vmatmul.msk.bf16.vlgmr.msra.gmra.mxu0 %vm933_vm10, %v1201_v33  ;;  %1800 = vmatmul.msk.bf16.vlgmr.msra.gmra.mxu2 %vm933_vm10, %v1241_v55 }
 0x2ef   : > { %v959_v34 = vpop.f32.mrf.mxu3 }
 0x2f7   : > { %v961_v35 = vpop.f32.mrf.mxu3 }
 0x2f9   : > { %v995_v36 = vpop.f32.mrf.mxu1 }
 0x2fa   : > { %v996_v37 = vadd.f32 %v995_v36, %v959_v34 }
 0x2ff   : > { %v1033_v38 = vpop.f32.mrf.mxu3 }
 0x300   : > { %v1038_v39 = vadd.f32 %v1033_v38, %v996_v37 }
 0x301   : > { %v997_v40 = vpop.f32.mrf.mxu1 }
 0x307   : > { %v946_v41 = vpop.f32.mrf.mxu2  ;;  %v1035_v42 = vpop.f32.mrf.mxu3 }
 0x30f   : > { %v948_v43 = vpop.f32.mrf.mxu2 }
 0x311   : > { %v982_v44 = vpop.f32.mrf.mxu0 }
 0x312   : > { %v983_v4 = vadd.f32 %v982_v44, %v946_v41 }
 0x317   : > { %v1020_v45 = vpop.f32.mrf.mxu2 }
 0x318   : > { %v1037_v6 = vadd.f32 %v1020_v45, %v983_v4 }
 0x319   : > { %v984_v46 = vpop.f32.mrf.mxu0 }
 0x31b   : > { %v1113_v47 = vpop.f32.mrf.mxu3 }
 0x31d   : > { %v1073_v48 = vpop.f32.mrf.mxu1 }
 0x31e   : > { %v1078_v49 = vadd.f32 %v1073_v48, %v1038_v39 }
 0x31f   : > { %v1022_v50 = vpop.f32.mrf.mxu2 }
 0x320   : > { %v1118_v51 = vadd.f32 %v1113_v47, %v1078_v49 }
 0x321   : > { %v1060_v52 = vpop.f32.mrf.mxu0 }
 0x322   : > { %v1077_v8 = vadd.f32 %v1060_v52, %v1037_v6 }
 0x323   : > { %v1115_v53 = vpop.f32.mrf.mxu3 }
 0x325   : > { %v1075_v54 = vpop.f32.mrf.mxu1 }
 0x327   : > { %v1100_v56 = vpop.f32.mrf.mxu2 }
 0x328   : > { %v1117_v11 = vadd.f32 %v1100_v56, %v1077_v8 }
 0x329   : > { %v1062_v57 = vpop.f32.mrf.mxu0 }
 0x32b   : > { %v1194_v58 = vpop.f32.mrf.mxu3 }
 0x32d   : > { %v1153_v59 = vpop.f32.mrf.mxu1 }
 0x32e   : > { %v1158_v60 = vadd.f32 %v1153_v59, %v1118_v51 }
 0x32f   : > { %v1102_v61 = vpop.f32.mrf.mxu2 }
 0x330   : > { %v1199_v62 = vadd.f32 %v1194_v58, %v1158_v60 }
 0x331   : > { %v1140_v63 = vpop.f32.mrf.mxu0 }
 0x332   : > { %v1157_v14 = vadd.f32 %v1140_v63, %v1117_v11 }
 0x333   : > { %v1196_v0 = vpop.f32.mrf.mxu3 }
 0x335   : > { %v1155_v1 = vpop.f32.mrf.mxu1 }
 0x337   : > { %v1181_v2 = vpop.f32.mrf.mxu2 }
 0x338   : > { %v1198_v16 = vadd.f32 %v1181_v2, %v1157_v14 }
 0x339   : > { %v1142_v3 = vpop.f32.mrf.mxu0 }
 0x33b   : > { %v1275_v5 = vpop.f32.mrf.mxu3 }
 0x33d   : > { %v1235_v7 = vpop.f32.mrf.mxu1 }
 0x33e   : > { %v1240_v9 = vadd.f32 %v1235_v7, %v1199_v62 }
 0x33f   : > { %v1183_v10 = vpop.f32.mrf.mxu2 }
 0x340   : > { %v1280_v12 = vadd.f32 %v1275_v5, %v1240_v9 }
 0x341   : > { %v1222_v13 = vpop.f32.mrf.mxu0 }
 0x342   : > { %v1239_v19 = vadd.f32 %v1222_v13, %v1198_v16  ;;  %v1288_v20 = vadd.f32 %v1285_v17, %v1280_v12 }
 0x343   : > { %v1277_v15 = vpop.f32.mrf.mxu3 }
 0x344   : > { %v1514_v25 = vrot.slane %v1288_v20, 7 }
 0x345   : > { %v1237_v18 = vpop.f32.mrf.mxu1 }
 0x347   : > { %v1262_v21 = vpop.f32.mrf.mxu2 }
 0x348   : > { %v1279_v22 = vadd.f32 %v1262_v21, %v1239_v19 }
 0x349   : > { %v1224_v23 = vpop.f32.mrf.mxu0 }
 0x34a   : > { %v1287_v24 = vadd.f32 %v1285_v17, %v1279_v22 }
 0x34c   : > { %1305 = vst.msk [vmem:[%s2352_s25] sm:$0x1] %vm1304_vm7, %v1287_v24  ;;  %v1313_v26 = vperm.slane %v1287_v24, 0  ;;  %v1290_v27 = vrot.slane %v1287_v24, 1  ;;  %v1293_v28 = vrot.slane %v1287_v24, 4  ;;  %v1292_v29 = vrot.slane %v1287_v24, 3 }
 0x34d   : > { %v1296_v55 = vrot.slane %v1287_v24, 7  ;;  %v1291_v30 = vrot.slane %v1287_v24, 2  ;;  %v2360_v31 = vsel %vm1515_vm8, %v1287_v24, %v1514_v25  ;;  %v1295_v33 = vrot.slane %v1287_v24, 6 }
 0x34e   : > { %1417 = vrot.lane.b32.xlu2 %v1313_v26, %s2044_s0  ;;  %1385 = vrot.lane.b32.xlu0 %v1313_v26, %s2039_s21  ;;  %1306 = vst.msk [vmem:[%s2352_s25 + $0x8] sm:$0x1] %vm1304_vm7, %v1290_v27  ;;  %v1294_v34 = vrot.slane %v1287_v24, 5  ;;  %v2368_v35 = vsel %vm1520_vm9, %v1287_v24, %v1514_v25  ;;  %v2371_v36 = vsel %vm1523_vm15, %v1287_v24, %v1514_v25  ;;  %v1314_v41 = vperm.slane %v1290_v27, 0 }
 0x34f   : > { %1321 = vrot.lane.b32.xlu1 %v1313_v26, %s2670_s27  ;;  %v1264_v32 = vpop.f32.mrf.mxu2  ;;  %1309 = vst.msk [vmem:[%s2352_s25 + $0x20] sm:$0x1] %vm1304_vm7, %v1293_v28  ;;  %v2375_v37 = vsel %vm1517_vm0, %v1287_v24, %v1514_v25  ;;  %v2377_v38 = vsel %vm1529_vm1, %v1287_v24, %v1514_v25  ;;  %v2381_v39 = vsel %vm1532_vm2, %v1287_v24, %v1514_v25  ;;  %v1317_v43 = vperm.slane %v1293_v28, 0 }
 0x350   : > { %1308 = vst.msk [vmem:[%s2352_s25 + $0x18] sm:$0x1] %vm1304_vm7, %v1292_v29  ;;  %v2383_v40 = vsel %vm1526_vm3, %v1287_v24, %v1514_v25  ;;  %v2389_v42 = vsel %vm1535_vm11, %v1514_v25, %v1287_v24  ;;  %v1316_v44 = vperm.slane %v1292_v29, 0  ;;  %v2397_v45 = vperm.slane %v1296_v55, 0 }
 0x351   : > { %1312 = vst.msk [vmem:[%s2352_s25 + $0x38] sm:$0x1] %vm1304_vm7, %v1296_v55  ;;  %v1319_v46 = vperm.slane %v1295_v33, 0  ;;  %v1315_v47 = vperm.slane %v1291_v30, 0  ;;  %v1318_v48 = vperm.slane %v1294_v34, 0  ;;  %v1539_v56 = vperm.slane %v2360_v31, 1 }
 0x352   : > { %1307 = vst.msk [vmem:[%s2352_s25 + $0x10] sm:$0x1] %vm1304_vm7, %v1291_v30  ;;  %v1522_v59 = vrot.slane %v2368_v35, 2  ;;  %v1538_v62 = vperm.slane %v2360_v31, 0  ;;  %v1525_v1 = vrot.slane %v2371_v36, 3  ;;  %v1519_v2 = vrot.slane %v2375_v37, 1 }
 0x353   : > { %1311 = vst.msk [vmem:[%s2352_s25 + $0x30] sm:$0x1] %vm1304_vm7, %v1295_v33  ;;  %v1531_v9 = vrot.slane %v2377_v38, 5  ;;  %v1534_v16 = vrot.slane %v2381_v39, 6  ;;  %v1528_v17 = vrot.slane %v2383_v40, 4  ;;  %v1537_v29 = vrot.slane %v2389_v42, 7 }
 0x354   : > { %1310 = vst.msk [vmem:[%s2352_s25 + $0x28] sm:$0x1] %vm1304_vm7, %v1294_v34  ;;  %v1542_v61 = vperm.slane %v1522_v59, 0  ;;  %v1545_v4 = vperm.slane %v1525_v1, 1  ;;  %v1541_v5 = vperm.slane %v1519_v2, 1  ;;  %v1540_v6 = vperm.slane %v1519_v2, 0 }
 0x355   : > { %v1548_v11 = vperm.slane %v1531_v9, 0  ;;  %v1544_v12 = vperm.slane %v1525_v1, 0  ;;  %v1543_v13 = vperm.slane %v1522_v59, 1  ;;  %v1551_v19 = vperm.slane %v1534_v16, 1 }
 0x356   : > { %1481 = vrot.lane.b32.xlu0 %v1313_v26, %s2045_s22  ;;  %1323 = vrot.lane.b32.xlu2 %v1314_v41, %s2670_s27  ;;  %v1547_v20 = vperm.slane %v1528_v17, 1  ;;  %v1546_v21 = vperm.slane %v1528_v17, 0  ;;  %v1550_v25 = vperm.slane %v1534_v16, 0  ;;  %v1553_v30 = vperm.slane %v1537_v29, 1 }
 0x357   : > { %1353 = vrot.lane.b32.xlu1 %v1313_v26, %s2669_s2  ;;  %v1552_v31 = vperm.slane %v1537_v29, 0 }
 0x35e   : > { %1329 = vrot.lane.b32.xlu0 %v1317_v43, %s2670_s27  ;;  %1327 = vrot.lane.b32.xlu2 %v1316_v44, %s2670_s27 }
 0x35f   : > { %1449 = vrot.lane.b32.xlu1 %v1313_v26, %s2046_s28  ;;  %v1549_v26 = vperm.slane %v1531_v9, 1 }
 0x366   : > { %1335 = vrot.lane.b32.xlu0 %v2397_v45, %s2670_s27  ;;  %1333 = vrot.lane.b32.xlu2 %v1319_v46, %s2670_s27 }
 0x367   : > { %1325 = vrot.lane.b32.xlu1 %v1315_v47, %s2670_s27 }
 0x36e   : > { %1357 = vrot.lane.b32.xlu0 %v1315_v47, %s2669_s2  ;;  %1355 = vrot.lane.b32.xlu2 %v1314_v41, %s2669_s2 }
 0x36f   : > { %1331 = vrot.lane.b32.xlu1 %v1318_v48, %s2670_s27  ;;  %s1803_s27 = sshll.u32 %s2007_s11, 4 }
 0x376   : > { %1363 = vrot.lane.b32.xlu0 %v1318_v48, %s2669_s2  ;;  %1361 = vrot.lane.b32.xlu2 %v1317_v43, %s2669_s2 }
 0x377   : > { %1359 = vrot.lane.b32.xlu1 %v1316_v44, %s2669_s2 }
 0x37e   : > { %1391 = vrot.lane.b32.xlu0 %v1316_v44, %s2039_s21  ;;  %1367 = vrot.lane.b32.xlu2 %v2397_v45, %s2669_s2 }
 0x37f   : > { %1365 = vrot.lane.b32.xlu1 %v1319_v46, %s2669_s2  ;;  %s2047_s2 = smov 2  }
 0x386   : > { %1397 = vrot.lane.b32.xlu0 %v1319_v46, %s2039_s21  ;;  %1389 = vrot.lane.b32.xlu2 %v1315_v47, %s2039_s21 }
 0x387   : > { %1387 = vrot.lane.b32.xlu1 %v1314_v41, %s2039_s21 }
 0x38e   : > { %1419 = vrot.lane.b32.xlu0 %v1314_v41, %s2044_s0  ;;  %1395 = vrot.lane.b32.xlu2 %v1318_v48, %s2039_s21 }
 0x38f   : > { %1393 = vrot.lane.b32.xlu1 %v1317_v43, %s2039_s21 }
 0x396   : > { %1425 = vrot.lane.b32.xlu0 %v1317_v43, %s2044_s0  ;;  %1423 = vrot.lane.b32.xlu2 %v1316_v44, %s2044_s0 }
 0x397   : > { %1399 = vrot.lane.b32.xlu1 %v2397_v45, %s2039_s21  ;;  %s1622_s21 = sadd.s32 %s2003_s10, %s1803_s27  ;;  %s1612_s10 = scalar_lea.sflag [#allocation5], %s359_s23 }
 0x398   : > { %s1804_s26 = sshll.u32 %s1622_s21, 3 }
 0x39e   : > { %1431 = vrot.lane.b32.xlu0 %v2397_v45, %s2044_s0  ;;  %1429 = vrot.lane.b32.xlu2 %v1319_v46, %s2044_s0 }
 0x39f   : > { %1421 = vrot.lane.b32.xlu1 %v1315_v47, %s2044_s0 }
 0x3a6   : > { %1453 = vrot.lane.b32.xlu0 %v1315_v47, %s2046_s28  ;;  %1451 = vrot.lane.b32.xlu2 %v1314_v41, %s2046_s28 }
 0x3a7   : > { %1427 = vrot.lane.b32.xlu1 %v1318_v48, %s2044_s0  ;;  %s1624_s0 = scalar_lea.hbm %s2643_s8, %s1804_s26  ;;  %s1945_s26 = scalar_lea.hbm %s2643_s8, 256 }
 0x3a8   : > { %v1418_v49 = vpop.permute.xlu2 %1417 }
 0x3a9   : > { %1441 = vst.msk [vmem:[%s2352_s25 + $0x4] sm:$0x1] %vm1304_vm7, %v1418_v49 }
 0x3ae   : > { %1459 = vrot.lane.b32.xlu0 %v1318_v48, %s2046_s28  ;;  %1457 = vrot.lane.b32.xlu2 %v1317_v43, %s2046_s28 }
 0x3af   : > { %1455 = vrot.lane.b32.xlu1 %v1316_v44, %s2046_s28 }
 0x3b0   : > { %v1324_v50 = vpop.permute.xlu2 %1323 }
 0x3b1   : > { %1346 = vst.msk [vmem:[%s2352_s25 + $0x9] sm:$0x1] %vm1304_vm7, %v1324_v50 }
 0x3b6   : > { %1487 = vrot.lane.b32.xlu0 %v1316_v44, %s2045_s22  ;;  %1463 = vrot.lane.b32.xlu2 %v2397_v45, %s2046_s28 }
 0x3b7   : > { %1461 = vrot.lane.b32.xlu1 %v1319_v46, %s2046_s28  ;;  %s1627_s28 = sshll.u32 %s1624_s0, 4  ;;  %s1628_s28 = int_to_ptr.hbm [resolvable:$true] %s1627_s28 }
 0x3b8   : > { %v1328_v51 = vpop.permute.xlu2 %1327  ;;  %s1939_s11 = sshra.s32 %s1628_s28, 4  ;;  %s1940_s11 = int_to_ptr.hbm [resolvable:$true] %s1939_s11 }
 0x3b9   : > { %1348 = vst.msk [vmem:[%s2352_s25 + $0x19] sm:$0x1] %vm1304_vm7, %v1328_v51  ;;  %p1946_p4 = scmp.lt.s32.totalorder %s1940_s11, %s2643_s8 }
 0x3be   : > { %1493 = vrot.lane.b32.xlu0 %v1319_v46, %s2045_s22  ;;  %1485 = vrot.lane.b32.xlu2 %v1315_v47, %s2045_s22 }
 0x3bf   : > { %1483 = vrot.lane.b32.xlu1 %v1314_v41, %s2045_s22 }
 0x3c0   : > { %v1386_v52 = vpop.permute.xlu0 %1385  ;;  %v1334_v53 = vpop.permute.xlu2 %1333 }
 0x3c1   : > { %1409 = vst.msk [vmem:[%s2352_s25 + $0x3] sm:$0x1] %vm1304_vm7, %v1386_v52  ;;  %v1322_v54 = vpop.permute.xlu1 %1321 }
 0x3c2   : > { %1345 = vst.msk [vmem:[%s2352_s25 + $0x1] sm:$0x1] %vm1304_vm7, %v1322_v54 }
 0x3c3   : > { %1351 = vst.msk [vmem:[%s2352_s25 + $0x31] sm:$0x1] %vm1304_vm7, %v1334_v53 }
 0x3c6   : > { %1556 = vrot.lane.b32.xlu0 %v1539_v56, %s2047_s2  ;;  %1491 = vrot.lane.b32.xlu2 %v1318_v48, %s2045_s22 }
 0x3c7   : > { %1489 = vrot.lane.b32.xlu1 %v1317_v43, %s2045_s22 }
 0x3c8   : > { %v1482_v57 = vpop.permute.xlu0 %1481  ;;  %v1356_v58 = vpop.permute.xlu2 %1355 }
 0x3c9   : > { %1505 = vst.msk [vmem:[%s2352_s25 + $0x6] sm:$0x1] %vm1304_vm7, %v1482_v57  ;;  %v1354_v60 = vpop.permute.xlu1 %1353 }
 0x3ca   : > { %1377 = vst.msk [vmem:[%s2352_s25 + $0x2] sm:$0x1] %vm1304_vm7, %v1354_v60 }
 0x3cb   : > { %1378 = vst.msk [vmem:[%s2352_s25 + $0xa] sm:$0x1] %vm1304_vm7, %v1356_v58 }
 0x3ce   : > { %1562 = vrot.lane.b32.xlu0 %v1542_v61, %s2047_s2  ;;  %1554 = vrot.lane.b32.xlu2 %v1538_v62, %s2047_s2 }
 0x3cf   : > { %1495 = vrot.lane.b32.xlu1 %v2397_v45, %s2045_s22  ;;  %s1625_s22 = sshll.u32 %s2352_s25, 4  ;;  %s1626_s22 = int_to_ptr.vmem [resolvable:$true] %s1625_s22 }
 0x3d0   : > { %v1330_v63 = vpop.permute.xlu0 %1329  ;;  %v1362_v0 = vpop.permute.xlu2 %1361 }
 0x3d1   : > { %v1450_v3 = vpop.permute.xlu1 %1449  ;;  %1349 = vst.msk [vmem:[%s2352_s25 + $0x21] sm:$0x1] %vm1304_vm7, %v1330_v63 }
 0x3d2   : > { %1473 = vst.msk [vmem:[%s2352_s25 + $0x5] sm:$0x1] %vm1304_vm7, %v1450_v3 }
 0x3d3   : > { %1381 = vst.msk [vmem:[%s2352_s25 + $0x22] sm:$0x1] %vm1304_vm7, %v1362_v0 }
 0x3d6   : > { %1568 = vrot.lane.b32.xlu0 %v1545_v4, %s2047_s2  ;;  %1560 = vrot.lane.b32.xlu2 %v1541_v5, %s2047_s2 }
 0x3d7   : > { %1558 = vrot.lane.b32.xlu1 %v1540_v6, %s2047_s2 }
 0x3d8   : > { %v1336_v7 = vpop.permute.xlu0 %1335  ;;  %v1368_v8 = vpop.permute.xlu2 %1367 }
 0x3d9   : > { %1352 = vst.msk [vmem:[%s2352_s25 + $0x39] sm:$0x1] %vm1304_vm7, %v1336_v7  ;;  %v1326_v10 = vpop.permute.xlu1 %1325 }
 0x3da   : > { %1347 = vst.msk [vmem:[%s2352_s25 + $0x11] sm:$0x1] %vm1304_vm7, %v1326_v10 }
 0x3db   : > { %1384 = vst.msk [vmem:[%s2352_s25 + $0x3a] sm:$0x1] %vm1304_vm7, %v1368_v8 }
 0x3de   : > { %1574 = vrot.lane.b32.xlu0 %v1548_v11, %s2047_s2  ;;  %1566 = vrot.lane.b32.xlu2 %v1544_v12, %s2047_s2 }
 0x3df   : > { %1564 = vrot.lane.b32.xlu1 %v1543_v13, %s2047_s2 }
 0x3e0   : > { %v1358_v14 = vpop.permute.xlu0 %1357  ;;  %v1390_v15 = vpop.permute.xlu2 %1389 }
 0x3e1   : > { %1379 = vst.msk [vmem:[%s2352_s25 + $0x12] sm:$0x1] %vm1304_vm7, %v1358_v14  ;;  %v1332_v18 = vpop.permute.xlu1 %1331 }
 0x3e2   : > { %1350 = vst.msk [vmem:[%s2352_s25 + $0x29] sm:$0x1] %vm1304_vm7, %v1332_v18 }
 0x3e3   : > { %1411 = vst.msk [vmem:[%s2352_s25 + $0x13] sm:$0x1] %vm1304_vm7, %v1390_v15 }
 0x3e6   : > { %1580 = vrot.lane.b32.xlu0 %v1551_v19, %s2047_s2  ;;  %1572 = vrot.lane.b32.xlu2 %v1547_v20, %s2047_s2 }
 0x3e7   : > { %1570 = vrot.lane.b32.xlu1 %v1546_v21, %s2047_s2 }
 0x3e8   : > { %v1364_v22 = vpop.permute.xlu0 %1363  ;;  %v1396_v23 = vpop.permute.xlu2 %1395 }
 0x3e9   : > { %1382 = vst.msk [vmem:[%s2352_s25 + $0x2a] sm:$0x1] %vm1304_vm7, %v1364_v22  ;;  %v1360_v24 = vpop.permute.xlu1 %1359 }
 0x3ea   : > { %1380 = vst.msk [vmem:[%s2352_s25 + $0x1a] sm:$0x1] %vm1304_vm7, %v1360_v24 }
 0x3eb   : > { %1414 = vst.msk [vmem:[%s2352_s25 + $0x2b] sm:$0x1] %vm1304_vm7, %v1396_v23 }
 0x3ee   : > { %1578 = vrot.lane.b32.xlu2 %v1550_v25, %s2047_s2 }
 0x3ef   : > { %1576 = vrot.lane.b32.xlu1 %v1549_v26, %s2047_s2 }
 0x3f0   : > { %v1392_v27 = vpop.permute.xlu0 %1391  ;;  %v1424_v28 = vpop.permute.xlu2 %1423 }
 0x3f1   : > { %1412 = vst.msk [vmem:[%s2352_s25 + $0x1b] sm:$0x1] %vm1304_vm7, %v1392_v27  ;;  %v1366_v55 = vpop.permute.xlu1 %1365 }
 0x3f2   : > { %1383 = vst.msk [vmem:[%s2352_s25 + $0x32] sm:$0x1] %vm1304_vm7, %v1366_v55 }
 0x3f3   : > { %1444 = vst.msk [vmem:[%s2352_s25 + $0x1c] sm:$0x1] %vm1304_vm7, %v1424_v28 }
 0x3f6   : > { %1584 = vrot.lane.b32.xlu2 %v1553_v30, %s2047_s2 }
 0x3f7   : > { %1582 = vrot.lane.b32.xlu1 %v1552_v31, %s2047_s2  ;;  %s1941_s2 = scalar_lea.hbm %s1940_s11, 64 }
 0x3f8   : > { %v1398_v32 = vpop.permute.xlu0 %1397  ;;  %v1430_v33 = vpop.permute.xlu2 %1429  ;;  %p1942_p0 = scmp.ne.s32.totalorder %s1940_s11, %s1941_s2  ;;  %p1947_p5 = scmp.lt.s32.totalorder %s1945_s26, %s1941_s2 }
 0x3f9   : > { %1415 = vst.msk [vmem:[%s2352_s25 + $0x33] sm:$0x1] %vm1304_vm7, %v1398_v32  ;;  %v1388_v34 = vpop.permute.xlu1 %1387 }
 0x3fa   : > { %1410 = vst.msk [vmem:[%s2352_s25 + $0xb] sm:$0x1] %vm1304_vm7, %v1388_v34  ;;  %p1943_p1 = pnand %p1942_p0, %p2150_p3  ;;  %p1948_p6 = por %p1947_p5, %p1946_p4 }
 0x3fb   : > { %1447 = vst.msk [vmem:[%s2352_s25 + $0x34] sm:$0x1] %vm1304_vm7, %v1430_v33 }
 0x3fc   : > { %p1944_p2 = pneg %p1943_p1 }
 0x3fe   : > { %p1949_p7 = pnand %p1948_p6, %p1944_p2 }
 0x400   : > { %v1420_v35 = vpop.permute.xlu0 %1419  ;;  %v1452_v36 = vpop.permute.xlu2 %1451 }
 0x401   : > { %1442 = vst.msk [vmem:[%s2352_s25 + $0xc] sm:$0x1] %vm1304_vm7, %v1420_v35  ;;  %v1394_v37 = vpop.permute.xlu1 %1393 }
 0x402   : > { %1413 = vst.msk [vmem:[%s2352_s25 + $0x23] sm:$0x1] %vm1304_vm7, %v1394_v37 }
 0x403   : > { %1474 = vst.msk [vmem:[%s2352_s25 + $0xd] sm:$0x1] %vm1304_vm7, %v1452_v36 }
 0x408   : > { %v1426_v38 = vpop.permute.xlu0 %1425  ;;  %v1458_v39 = vpop.permute.xlu2 %1457 }
 0x409   : > { %1445 = vst.msk [vmem:[%s2352_s25 + $0x24] sm:$0x1] %vm1304_vm7, %v1426_v38  ;;  %v1400_v40 = vpop.permute.xlu1 %1399 }
 0x40a   : > { %1416 = vst.msk [vmem:[%s2352_s25 + $0x3b] sm:$0x1] %vm1304_vm7, %v1400_v40 }
 0x40b   : > { %1477 = vst.msk [vmem:[%s2352_s25 + $0x25] sm:$0x1] %vm1304_vm7, %v1458_v39 }
 0x410   : > { %v1432_v41 = vpop.permute.xlu0 %1431  ;;  %v1464_v42 = vpop.permute.xlu2 %1463 }
 0x411   : > { %1448 = vst.msk [vmem:[%s2352_s25 + $0x3c] sm:$0x1] %vm1304_vm7, %v1432_v41  ;;  %v1422_v43 = vpop.permute.xlu1 %1421 }
 0x412   : > { %1443 = vst.msk [vmem:[%s2352_s25 + $0x14] sm:$0x1] %vm1304_vm7, %v1422_v43 }
 0x413   : > { %1480 = vst.msk [vmem:[%s2352_s25 + $0x3d] sm:$0x1] %vm1304_vm7, %v1464_v42 }
 0x418   : > { %v1454_v44 = vpop.permute.xlu0 %1453  ;;  %v1486_v45 = vpop.permute.xlu2 %1485 }
 0x419   : > { %1475 = vst.msk [vmem:[%s2352_s25 + $0x15] sm:$0x1] %vm1304_vm7, %v1454_v44  ;;  %v1428_v46 = vpop.permute.xlu1 %1427 }
 0x41a   : > { %1446 = vst.msk [vmem:[%s2352_s25 + $0x2c] sm:$0x1] %vm1304_vm7, %v1428_v46 }
 0x41b   : > { %1507 = vst.msk [vmem:[%s2352_s25 + $0x16] sm:$0x1] %vm1304_vm7, %v1486_v45 }
 0x420   : > { %v1460_v47 = vpop.permute.xlu0 %1459  ;;  %v1492_v48 = vpop.permute.xlu2 %1491 }
 0x421   : > { %1478 = vst.msk [vmem:[%s2352_s25 + $0x2d] sm:$0x1] %vm1304_vm7, %v1460_v47  ;;  %v1456_v49 = vpop.permute.xlu1 %1455 }
 0x422   : > { %1476 = vst.msk [vmem:[%s2352_s25 + $0x1d] sm:$0x1] %vm1304_vm7, %v1456_v49 }
 0x423   : > { %1510 = vst.msk [vmem:[%s2352_s25 + $0x2e] sm:$0x1] %vm1304_vm7, %v1492_v48 }
 0x428   : > { %v1488_v50 = vpop.permute.xlu0 %1487  ;;  %v1555_v52 = vpop.permute.xlu2 %1554 }
 0x429   : > { %1508 = vst.msk [vmem:[%s2352_s25 + $0x1e] sm:$0x1] %vm1304_vm7, %v1488_v50  ;;  %v1462_v51 = vpop.permute.xlu1 %1461 }
 0x42a   : > { %1479 = vst.msk [vmem:[%s2352_s25 + $0x35] sm:$0x1] %vm1304_vm7, %v1462_v51 }
 0x430   : > { %v1494_v53 = vpop.permute.xlu0 %1493  ;;  %v1561_v59 = vpop.permute.xlu2 %1560 }
 0x431   : > { %1511 = vst.msk [vmem:[%s2352_s25 + $0x36] sm:$0x1] %vm1304_vm7, %v1494_v53  ;;  %v1484_v54 = vpop.permute.xlu1 %1483 }
 0x432   : > { %1506 = vst.msk [vmem:[%s2352_s25 + $0xe] sm:$0x1] %vm1304_vm7, %v1484_v54 }
 0x438   : > { %v1557_v56 = vpop.permute.xlu0 %1556  ;;  %v1567_v62 = vpop.permute.xlu2 %1566 }
 0x439   : > { %v1587_v57 = vsel %vm1586_vm12, %v1555_v52, %v1557_v56  ;;  %v1490_v58 = vpop.permute.xlu1 %1489 }
 0x43a   : > { %1603 = vst.msk [vmem:[%s2352_s25 + $0x7] sm:$0x1] %vm1304_vm7, %v1587_v57 }
 0x43b   : > { %1509 = vst.msk [vmem:[%s2352_s25 + $0x26] sm:$0x1] %vm1304_vm7, %v1490_v58 }
 0x440   : > { %v1563_v60 = vpop.permute.xlu0 %1562  ;;  %v1573_v3 = vpop.permute.xlu2 %1572 }
 0x441   : > { %v1496_v61 = vpop.permute.xlu1 %1495 }
 0x442   : > { %1512 = vst.msk [vmem:[%s2352_s25 + $0x3e] sm:$0x1] %vm1304_vm7, %v1496_v61 }
 0x448   : > { %v1569_v63 = vpop.permute.xlu0 %1568  ;;  %v1579_v7 = vpop.permute.xlu2 %1578 }
 0x449   : > { %v1590_v0 = vsel %vm1586_vm12, %v1567_v62, %v1569_v63  ;;  %v1559_v1 = vpop.permute.xlu1 %1558 }
 0x44a   : > { %1606 = vst.msk [vmem:[%s2352_s25 + $0x1f] sm:$0x1] %vm1304_vm7, %v1590_v0  ;;  %v1588_v2 = vsel %vm1586_vm12, %v1559_v1, %v1561_v59 }
 0x44b   : > { %1604 = vst.msk [vmem:[%s2352_s25 + $0xf] sm:$0x1] %vm1304_vm7, %v1588_v2 }
 0x450   : > { %v1575_v4 = vpop.permute.xlu0 %1574  ;;  %v1585_v14 = vpop.permute.xlu2 %1584 }
 0x451   : > { %v1565_v5 = vpop.permute.xlu1 %1564 }
 0x452   : > { %v1589_v6 = vsel %vm1586_vm12, %v1563_v60, %v1565_v5 }
 0x453   : > { %1605 = vst.msk [vmem:[%s2352_s25 + $0x17] sm:$0x1] %vm1304_vm7, %v1589_v6 }
 0x458   : > { %v1581_v8 = vpop.permute.xlu0 %1580 }
 0x459   : > { %v1593_v9 = vsel %vm1586_vm12, %v1579_v7, %v1581_v8  ;;  %v1571_v10 = vpop.permute.xlu1 %1570 }
 0x45a   : > { %1609 = vst.msk [vmem:[%s2352_s25 + $0x37] sm:$0x1] %vm1304_vm7, %v1593_v9  ;;  %v1591_v11 = vsel %vm1586_vm12, %v1571_v10, %v1573_v3 }
 0x45b   : > { %1607 = vst.msk [vmem:[%s2352_s25 + $0x27] sm:$0x1] %vm1304_vm7, %v1591_v11 }
 0x461   : > { %v1577_v12 = vpop.permute.xlu1 %1576 }
 0x462   : > { %v1592_v13 = vsel %vm1586_vm12, %v1575_v4, %v1577_v12 }
 0x463   : > { %1608 = vst.msk [vmem:[%s2352_s25 + $0x2f] sm:$0x1] %vm1304_vm7, %v1592_v13 }
 0x469   : > { %v1583_v15 = vpop.permute.xlu1 %1582 }
 0x46a   : > { %v1594_v16 = vsel %vm1586_vm12, %v1583_v15, %v1585_v14 }
 0x46b   : > { %1610 = vst.msk [vmem:[%s2352_s25 + $0x3f] sm:$0x1] %vm1304_vm7, %v1594_v16 }
 0x46c   : > { %1952 = shalt.err (!%p1949_p7)
}
 0x46d   : > { %s2048_s23 = smov 128   ;;  %s2049_s25 = smov 256  }
 0x46e   : > { %s2050_s0 = smov 8  }
 0x46f   : > { %1809 = dma.vmem_to_hbm [thread:$0]  (%p2150_p3), %s1626_s22, 1024, %s1628_s28, %s1612_s10, %s2048_s23, %s2049_s25, %s2050_s0  }
 0x470 PF: > { %p1815_p9 = scmp.ge.s32.totalorder %s2019_s14, 2  ;;  %s1642_s27 = sand.u32 1, %s1991_s29  }
 0x471   : > { %s1643_s11 = scalar_lea.sflag [#allocation5], %s1642_s27 }
 0x472   : > { %p1812_p10 = pnand %p1815_p9, %p2159_p8 }
 0x474   : > { %p1813_p11 = pneg %p1812_p10 }
 0x476   : > { %1986 = dma.done.wait (%p1813_p11), %s1643_s11, 1024  }
 0x477   : > { %1988 = vsyncadd (%p1813_p11), %s1643_s11, 4294966272  ;;  %s22_s14 = sadd.s32 1, %s2019_s14   ;;  %s2673_s29 = smov %s1995_s30 }
 0x478   : > { %p19_p12 = scmp.ge.s32.totalorder %s22_s14, 6   ;;  %s2674_s30 = smov %s1999_s9 }
 0x479   : > { %s2675_s9 = smov %s2168_s24  ;;  %s2676_s10 = smov %s2011_s12 }
 0x47a   : > { %s2677_s11 = smov %s2015_s13  ;;  %s2678_s12 = smov %s2681_s16 }
 0x47b   : > { %s2679_s13 = smov %s2685_s17  ;;  %21 = sbr.rel (!%p19_p12) target bundleno = 8 (0x8), region = 93 }
 0x480   :  { %1649 = vsyncpa [#allocation5], 1 }
 0x481   :  { %1651 = vsyncpa [#allocation5 + $0x1], 1 }

</bundles_post_ra>
